<compile_context>
chip_gen: v7x
topology: tpu7x:2x2x1
jax: 0.10.0
libtpu: 0.0.40
codegen_flags: <defaults>
</compile_context>

<pallas_src>
import functools

import jax
import jax.numpy as jnp
from jax.experimental import pallas as pl
from jax.experimental.pallas import tpu as pltpu


KH1, KW1, CO1 = 4, 2, 32      # conv1: Conv2d(1, 32, (4, 2))
KH2, KW2, CO2 = 4, 2, 64      # conv2: Conv2d(32, 64, (4, 2))

_VMEM = pl.BlockSpec(memory_space=pltpu.MemorySpace.VMEM)


# ---------------------------------------------------------------------------
# Fused forward kernel
# ---------------------------------------------------------------------------
def _fused_kernel(
    # inputs
    x_ref, patches_ref,
    w1_ref, b1_ref, w2_ref, b2_ref,
    wc1_ref, bc1_ref, wc2_ref, bc2_ref,
    wf1a_ref, wf1b0_ref, wf1b1_ref, bf1_ref,
    wf2_ref, bf2_ref,
    # output
    out_ref,
    # scratch
    s1_ref, p1_ref, c2_ref,
    *, batch, oh1, ow1, ph1, pw1, oh2, ow2,
):
    f32 = jnp.float32

    # ---------------- branch 1: MLP on x ------------------------------------
    x1 = jnp.dot(x_ref[...], w1_ref[...], preferred_element_type=f32) + b1_ref[...]
    x1 = jnp.maximum(x1, 0.0)
    x1 = jnp.dot(x1, w2_ref[...], preferred_element_type=f32) + b2_ref[...]
    x1 = jnp.maximum(x1, 0.0)                                   # (B, 64)

    # ---------------- conv1 + ReLU  (rows = b*oh1*ow1 + y*ow1 + x) -----------
    conv1 = jnp.dot(patches_ref[...], wc1_ref[...], preferred_element_type=f32)
    s1_ref[...] = jnp.maximum(conv1 + bc1_ref[...], 0.0)        # (B*100, 32)

    # ---------------- maxpool 2x2 on conv1 -----------------------------------
    # p1 rows = b*ph1*pw1 + i*pw1 + j
    for b in range(batch):
        for i in range(ph1):
            src = b * oh1 * ow1 + (2 * i) * ow1
            dst = b * ph1 * pw1 + i * pw1
            r00 = s1_ref[pl.ds(src + 0, pw1, stride=2), :]
            r01 = s1_ref[pl.ds(src + 1, pw1, stride=2), :]
            r10 = s1_ref[pl.ds(src + ow1 + 0, pw1, stride=2), :]
            r11 = s1_ref[pl.ds(src + ow1 + 1, pw1, stride=2), :]
            p1_ref[pl.ds(dst, pw1), :] = jnp.maximum(
                jnp.maximum(r00, r01), jnp.maximum(r10, r11))

    # ---------------- conv2: in-kernel im2col, per-tap matmuls ---------------
    w_taps = [wc2_ref[k] for k in range(KH2 * KW2)]             # each (32, 64)
    bias2 = bc2_ref[...]                                        # (1, 64)
    for b in range(batch):
        for oy in range(oh2):
            acc = bias2
            for di in range(KH2):
                for dj in range(KW2):
                    k = di * KW2 + dj
                    src = b * ph1 * pw1 + (oy + di) * pw1 + dj
                    chunk = p1_ref[pl.ds(src, ow2), :]          # (ow2, 32)
                    acc = acc + jnp.dot(chunk, w_taps[k],
                                        preferred_element_type=f32)
            c2_ref[pl.ds((b * oh2 + oy) * ow2, ow2), :] = acc   # pre-ReLU

    # ---------------- maxpool 2x2 on conv2 + ReLU (ReLU commutes with max) ---
    # c2 rows = b*oh2*ow2 + oy*ow2 + ox; output spatial positions jo in {0, 1}.
    def pooled(jo):
        stride_b = oh2 * ow2
        m = jnp.maximum(
            jnp.maximum(c2_ref[pl.ds(2 * jo + 0, batch, stride=stride_b), :],
                        c2_ref[pl.ds(2 * jo + 1, batch, stride=stride_b), :]),
            jnp.maximum(c2_ref[pl.ds(2 * jo + ow2 + 0, batch, stride=stride_b), :],
                        c2_ref[pl.ds(2 * jo + ow2 + 1, batch, stride=stride_b), :]))
        return jnp.maximum(m, 0.0)                              # (B, 64)

    p2_0 = pooled(0)
    p2_1 = pooled(1)

    # ---------------- head: fc1 (concat folded into split weights) + fc2 -----
    h = (jnp.dot(x1, wf1a_ref[...], preferred_element_type=f32)
         + jnp.dot(p2_0, wf1b0_ref[...], preferred_element_type=f32)
         + jnp.dot(p2_1, wf1b1_ref[...], preferred_element_type=f32)
         + bf1_ref[...])
    h = jnp.maximum(h, 0.0)                                     # (B, 128)
    out_ref[...] = (jnp.dot(h, wf2_ref[...], preferred_element_type=f32)
                    + bf2_ref[...])


# ---------------------------------------------------------------------------
# Parameter construction (deterministic, PyTorch-like uniform init), stored in
# kernel-friendly layouts but derived from the PyTorch tensor layouts so the
# mapping stays documented / portable.
# ---------------------------------------------------------------------------
def _uniform(key, shape, fan_in):
    bound = 1.0 / jnp.sqrt(jnp.float32(fan_in))
    return jax.random.uniform(key, shape, jnp.float32, -bound, bound)


def init_params(key):
    ks = jax.random.split(key, 12)
    p = {}
    # linear1: 4 -> 32 ; linear2: 32 -> 64   (stored as (in, out))
    p["w1"] = _uniform(ks[0], (4, 32), 4)
    p["b1"] = _uniform(ks[1], (1, 32), 4)
    p["w2"] = _uniform(ks[2], (32, 64), 32)
    p["b2"] = _uniform(ks[3], (1, 64), 32)
    # conv1: torch weight (32, 1, 4, 2) -> (kh*kw, out_c), tap k = di*2 + dj
    wc1_t = _uniform(ks[4], (32, 1, 4, 2), 1 * KH1 * KW1)
    p["wc1"] = wc1_t.transpose(1, 2, 3, 0).reshape(KH1 * KW1, 32)
    p["bc1"] = _uniform(ks[5], (1, 32), 1 * KH1 * KW1)
    # conv2: torch weight (64, 32, 4, 2) -> (taps, c_in, c_out), tap k = di*2+dj
    wc2_t = _uniform(ks[6], (64, 32, 4, 2), 32 * KH2 * KW2)
    p["wc2"] = wc2_t.transpose(2, 3, 1, 0).reshape(KH2 * KW2, 32, 64)
    p["bc2"] = _uniform(ks[7], (1, 64), 32 * KH2 * KW2)
    # fc1: torch weight (128, 192); W.T rows 0..63 multiply x1, rows 64+ch*2+jo
    # multiply the conv-branch NCHW-flattened features (ch channel, jo = W pos).
    wf1_t = _uniform(ks[8], (192, 128), 192)
    p["wf1a"] = wf1_t[0:64]
    tail = wf1_t[64:].reshape(64, 2, 128)
    p["wf1b0"] = tail[:, 0, :]
    p["wf1b1"] = tail[:, 1, :]
    p["bf1"] = _uniform(ks[9], (1, 128), 192)
    # fc2: 128 -> 5
    p["wf2"] = _uniform(ks[10], (128, 5), 128)
    p["bf2"] = _uniform(ks[11], (1, 5), 128)
    return p


# ---------------------------------------------------------------------------
# Forward pass (mirrors Model.forward), single fused pallas_call
# ---------------------------------------------------------------------------
@jax.jit
def forward(params, area, x):
    batch, cin, h, w = area.shape
    assert cin == 1 and x.shape == (batch, 4)
    oh1, ow1 = h - KH1 + 1, w - KW1 + 1
    ph1, pw1 = oh1 // 2, ow1 // 2
    oh2, ow2 = ph1 - KH2 + 1, pw1 - KW2 + 1
    ph2, pw2 = oh2 // 2, ow2 // 2
    # The original model's x2.reshape(-1, 128) requires the conv branch to end
    # at 64 * 1 * 2 features; this fused kernel is specialized to that shape.
    assert (oh2, ow2, ph2, pw2) == (2, 4, 1, 2), (oh2, ow2, ph2, pw2)

    # conv1 im2col on the input path (tiny, fused by XLA into one gather).
    a = area[:, 0]                                            # (B, H, W)
    patches = jnp.stack(
        [a[:, di:di + oh1, dj:dj + ow1]
         for di in range(KH1) for dj in range(KW1)],
        axis=-1,
    ).reshape(batch * oh1 * ow1, KH1 * KW1)                   # (B*100, 8)

    kernel = functools.partial(
        _fused_kernel, batch=batch, oh1=oh1, ow1=ow1,
        ph1=ph1, pw1=pw1, oh2=oh2, ow2=ow2)

    return pl.pallas_call(
        kernel,
        out_shape=jax.ShapeDtypeStruct((batch, 5), jnp.float32),
        in_specs=[_VMEM] * 16,
        out_specs=_VMEM,
        scratch_shapes=[
            pltpu.VMEM((batch * oh1 * ow1, CO1), jnp.float32),  # conv1 act
            pltpu.VMEM((batch * ph1 * pw1, CO1), jnp.float32),  # pooled1
            pltpu.VMEM((batch * oh2 * ow2, CO2), jnp.float32),  # conv2 act
        ],
    )(x, patches,
      params["w1"], params["b1"], params["w2"], params["b2"],
      params["wc1"], params["bc1"], params["wc2"], params["bc2"],
      params["wf1a"], params["wf1b0"], params["wf1b1"], params["bf1"],
      params["wf2"], params["bf2"])


if __name__ == "__main__":
    key = jax.random.PRNGKey(0)
    kp, ka, kx = jax.random.split(key, 3)

    params = init_params(kp)

    # (13, 11) spatial: conv(4,2)->(10,10) -pool-> (5,5) -conv(4,2)-> (2,4)
    # -pool-> (1,2), so the conv branch flattens to 64*1*2 = 128 features,
    # matching the module's x2.reshape(-1, 128).
    area = jax.random.normal(ka, (2, 1, 13, 11), jnp.float32)
    x = jax.random.normal(kx, (2, 4), jnp.float32)

    out = jax.block_until_ready(forward(params, area, x))
    assert out.shape == (2, 5), out.shape
    print("KERNEL_OK")
</pallas_src>

<mosaic_0001>
module attributes {stable_mosaic.version = 11 : i64} {
  func.func @_fused_kernel(%arg0: memref<2x4xf32, #tpu.memory_space<vmem>>, %arg1: memref<200x8xf32, #tpu.memory_space<vmem>>, %arg2: memref<4x32xf32, #tpu.memory_space<vmem>>, %arg3: memref<1x32xf32, #tpu.memory_space<vmem>>, %arg4: memref<32x64xf32, #tpu.memory_space<vmem>>, %arg5: memref<1x64xf32, #tpu.memory_space<vmem>>, %arg6: memref<8x32xf32, #tpu.memory_space<vmem>>, %arg7: memref<1x32xf32, #tpu.memory_space<vmem>>, %arg8: memref<8x32x64xf32, #tpu.memory_space<vmem>>, %arg9: memref<1x64xf32, #tpu.memory_space<vmem>>, %arg10: memref<64x128xf32, #tpu.memory_space<vmem>>, %arg11: memref<64x128xf32, #tpu.memory_space<vmem>>, %arg12: memref<64x128xf32, #tpu.memory_space<vmem>>, %arg13: memref<1x128xf32, #tpu.memory_space<vmem>>, %arg14: memref<128x5xf32, #tpu.memory_space<vmem>>, %arg15: memref<1x5xf32, #tpu.memory_space<vmem>>, %arg16: memref<2x5xf32, #tpu.memory_space<vmem>>, %arg17: memref<200x32xf32, #tpu.memory_space<vmem>>, %arg18: memref<50x32xf32, #tpu.memory_space<vmem>>, %arg19: memref<16x64xf32, #tpu.memory_space<vmem>>) attributes {dimension_semantics = [], scalar_prefetch = 0 : i64, scratch_operands = 3 : i64, tpu.core_type = #tpu.core_type<tc>} {
    %c0 = arith.constant 0 : index
    %c0_0 = arith.constant 0 : index
    %0 = vector.load %arg0[%c0, %c0_0] : memref<2x4xf32, #tpu.memory_space<vmem>>, vector<2x4xf32>
    %c0_1 = arith.constant 0 : index
    %c0_2 = arith.constant 0 : index
    %1 = vector.load %arg2[%c0_1, %c0_2] : memref<4x32xf32, #tpu.memory_space<vmem>>, vector<4x32xf32>
    %cst = arith.constant dense<0.000000e+00> : vector<2x32xf32>
    %2 = tpu.matmul %0, %1, %cst {dimension_numbers = #tpu.dot_dimension_numbers<[1], [0], [0], [1], [0, 0, 1, 1], [], []>} : vector<2x4xf32>, vector<4x32xf32>, vector<2x32xf32> -> vector<2x32xf32>
    %c0_3 = arith.constant 0 : index
    %c0_4 = arith.constant 0 : index
    %3 = vector.load %arg3[%c0_3, %c0_4] : memref<1x32xf32, #tpu.memory_space<vmem>>, vector<1x32xf32>
    %4 = vector.broadcast %3 : vector<1x32xf32> to vector<2x32xf32>
    %5 = arith.addf %2, %4 : vector<2x32xf32>
    %cst_5 = arith.constant 0.000000e+00 : f32
    %6 = vector.broadcast %cst_5 : f32 to vector<2x32xf32>
    %7 = arith.maximumf %5, %6 : vector<2x32xf32>
    %c0_6 = arith.constant 0 : index
    %c0_7 = arith.constant 0 : index
    %8 = vector.load %arg4[%c0_6, %c0_7] : memref<32x64xf32, #tpu.memory_space<vmem>>, vector<32x64xf32>
    %cst_8 = arith.constant dense<0.000000e+00> : vector<2x64xf32>
    %9 = tpu.matmul %7, %8, %cst_8 {dimension_numbers = #tpu.dot_dimension_numbers<[1], [0], [0], [1], [0, 0, 1, 1], [], []>} : vector<2x32xf32>, vector<32x64xf32>, vector<2x64xf32> -> vector<2x64xf32>
    %c0_9 = arith.constant 0 : index
    %c0_10 = arith.constant 0 : index
    %10 = vector.load %arg5[%c0_9, %c0_10] : memref<1x64xf32, #tpu.memory_space<vmem>>, vector<1x64xf32>
    %11 = vector.broadcast %10 : vector<1x64xf32> to vector<2x64xf32>
    %12 = arith.addf %9, %11 : vector<2x64xf32>
    %cst_11 = arith.constant 0.000000e+00 : f32
    %13 = vector.broadcast %cst_11 : f32 to vector<2x64xf32>
    %14 = arith.maximumf %12, %13 : vector<2x64xf32>
    %c0_12 = arith.constant 0 : index
    %c0_13 = arith.constant 0 : index
    %15 = vector.load %arg1[%c0_12, %c0_13] : memref<200x8xf32, #tpu.memory_space<vmem>>, vector<200x8xf32>
    %c0_14 = arith.constant 0 : index
    %c0_15 = arith.constant 0 : index
    %16 = vector.load %arg6[%c0_14, %c0_15] : memref<8x32xf32, #tpu.memory_space<vmem>>, vector<8x32xf32>
    %cst_16 = arith.constant dense<0.000000e+00> : vector<200x32xf32>
    %17 = tpu.matmul %15, %16, %cst_16 {dimension_numbers = #tpu.dot_dimension_numbers<[1], [0], [0], [1], [0, 0, 1, 1], [], []>} : vector<200x8xf32>, vector<8x32xf32>, vector<200x32xf32> -> vector<200x32xf32>
    %c0_17 = arith.constant 0 : index
    %c0_18 = arith.constant 0 : index
    %18 = vector.load %arg7[%c0_17, %c0_18] : memref<1x32xf32, #tpu.memory_space<vmem>>, vector<1x32xf32>
    %19 = vector.broadcast %18 : vector<1x32xf32> to vector<200x32xf32>
    %20 = arith.addf %17, %19 : vector<200x32xf32>
    %cst_19 = arith.constant 0.000000e+00 : f32
    %21 = vector.broadcast %cst_19 : f32 to vector<200x32xf32>
    %22 = arith.maximumf %20, %21 : vector<200x32xf32>
    %c0_20 = arith.constant 0 : index
    %c0_21 = arith.constant 0 : index
    %23 = vector.load %arg17[%c0_20, %c0_21] : memref<200x32xf32, #tpu.memory_space<vmem>>, vector<200x32xf32>
    tpu.vector_store %arg17[%c0_20, %c0_21], %22 {strides = array<i32>} : memref<200x32xf32, #tpu.memory_space<vmem>>, vector<200x32xf32>,
    %c0_22 = arith.constant 0 : index
    %c0_23 = arith.constant 0 : index
    %24 = tpu.strided_load %arg17[%c0_22, %c0_23] {strides = array<i32: 2, 1>} : memref<200x32xf32, #tpu.memory_space<vmem>>, vector<5x32xf32>
    %c1 = arith.constant 1 : index
    %c0_24 = arith.constant 0 : index
    %25 = tpu.strided_load %arg17[%c1, %c0_24] {strides = array<i32: 2, 1>} : memref<200x32xf32, #tpu.memory_space<vmem>>, vector<5x32xf32>
    %c10 = arith.constant 10 : index
    %c0_25 = arith.constant 0 : index
    %26 = tpu.strided_load %arg17[%c10, %c0_25] {strides = array<i32: 2, 1>} : memref<200x32xf32, #tpu.memory_space<vmem>>, vector<5x32xf32>
    %c11 = arith.constant 11 : index
    %c0_26 = arith.constant 0 : index
    %27 = tpu.strided_load %arg17[%c11, %c0_26] {strides = array<i32: 2, 1>} : memref<200x32xf32, #tpu.memory_space<vmem>>, vector<5x32xf32>
    %28 = arith.maximumf %24, %25 : vector<5x32xf32>
    %29 = arith.maximumf %26, %27 : vector<5x32xf32>
    %30 = arith.maximumf %28, %29 : vector<5x32xf32>
    %c0_27 = arith.constant 0 : index
    %c0_28 = arith.constant 0 : index
    %31 = vector.load %arg18[%c0_27, %c0_28] : memref<50x32xf32, #tpu.memory_space<vmem>>, vector<5x32xf32>
    tpu.vector_store %arg18[%c0_27, %c0_28], %30 {strides = array<i32>} : memref<50x32xf32, #tpu.memory_space<vmem>>, vector<5x32xf32>,
    %c20 = arith.constant 20 : index
    %c0_29 = arith.constant 0 : index
    %32 = tpu.strided_load %arg17[%c20, %c0_29] {strides = array<i32: 2, 1>} : memref<200x32xf32, #tpu.memory_space<vmem>>, vector<5x32xf32>
    %c21 = arith.constant 21 : index
    %c0_30 = arith.constant 0 : index
    %33 = tpu.strided_load %arg17[%c21, %c0_30] {strides = array<i32: 2, 1>} : memref<200x32xf32, #tpu.memory_space<vmem>>, vector<5x32xf32>
    %c30 = arith.constant 30 : index
    %c0_31 = arith.constant 0 : index
    %34 = tpu.strided_load %arg17[%c30, %c0_31] {strides = array<i32: 2, 1>} : memref<200x32xf32, #tpu.memory_space<vmem>>, vector<5x32xf32>
    %c31 = arith.constant 31 : index
    %c0_32 = arith.constant 0 : index
    %35 = tpu.strided_load %arg17[%c31, %c0_32] {strides = array<i32: 2, 1>} : memref<200x32xf32, #tpu.memory_space<vmem>>, vector<5x32xf32>
    %36 = arith.maximumf %32, %33 : vector<5x32xf32>
    %37 = arith.maximumf %34, %35 : vector<5x32xf32>
    %38 = arith.maximumf %36, %37 : vector<5x32xf32>
    %c5 = arith.constant 5 : index
    %c0_33 = arith.constant 0 : index
    %39 = vector.load %arg18[%c5, %c0_33] : memref<50x32xf32, #tpu.memory_space<vmem>>, vector<5x32xf32>
    tpu.vector_store %arg18[%c5, %c0_33], %38 {strides = array<i32>} : memref<50x32xf32, #tpu.memory_space<vmem>>, vector<5x32xf32>,
    %c40 = arith.constant 40 : index
    %c0_34 = arith.constant 0 : index
    %40 = tpu.strided_load %arg17[%c40, %c0_34] {strides = array<i32: 2, 1>} : memref<200x32xf32, #tpu.memory_space<vmem>>, vector<5x32xf32>
    %c41 = arith.constant 41 : index
    %c0_35 = arith.constant 0 : index
    %41 = tpu.strided_load %arg17[%c41, %c0_35] {strides = array<i32: 2, 1>} : memref<200x32xf32, #tpu.memory_space<vmem>>, vector<5x32xf32>
    %c50 = arith.constant 50 : index
    %c0_36 = arith.constant 0 : index
    %42 = tpu.strided_load %arg17[%c50, %c0_36] {strides = array<i32: 2, 1>} : memref<200x32xf32, #tpu.memory_space<vmem>>, vector<5x32xf32>
    %c51 = arith.constant 51 : index
    %c0_37 = arith.constant 0 : index
    %43 = tpu.strided_load %arg17[%c51, %c0_37] {strides = array<i32: 2, 1>} : memref<200x32xf32, #tpu.memory_space<vmem>>, vector<5x32xf32>
    %44 = arith.maximumf %40, %41 : vector<5x32xf32>
    %45 = arith.maximumf %42, %43 : vector<5x32xf32>
    %46 = arith.maximumf %44, %45 : vector<5x32xf32>
    %c10_38 = arith.constant 10 : index
    %c0_39 = arith.constant 0 : index
    %47 = vector.load %arg18[%c10_38, %c0_39] : memref<50x32xf32, #tpu.memory_space<vmem>>, vector<5x32xf32>
    tpu.vector_store %arg18[%c10_38, %c0_39], %46 {strides = array<i32>} : memref<50x32xf32, #tpu.memory_space<vmem>>, vector<5x32xf32>,
    %c60 = arith.constant 60 : index
    %c0_40 = arith.constant 0 : index
    %48 = tpu.strided_load %arg17[%c60, %c0_40] {strides = array<i32: 2, 1>} : memref<200x32xf32, #tpu.memory_space<vmem>>, vector<5x32xf32>
    %c61 = arith.constant 61 : index
    %c0_41 = arith.constant 0 : index
    %49 = tpu.strided_load %arg17[%c61, %c0_41] {strides = array<i32: 2, 1>} : memref<200x32xf32, #tpu.memory_space<vmem>>, vector<5x32xf32>
    %c70 = arith.constant 70 : index
    %c0_42 = arith.constant 0 : index
    %50 = tpu.strided_load %arg17[%c70, %c0_42] {strides = array<i32: 2, 1>} : memref<200x32xf32, #tpu.memory_space<vmem>>, vector<5x32xf32>
    %c71 = arith.constant 71 : index
    %c0_43 = arith.constant 0 : index
    %51 = tpu.strided_load %arg17[%c71, %c0_43] {strides = array<i32: 2, 1>} : memref<200x32xf32, #tpu.memory_space<vmem>>, vector<5x32xf32>
    %52 = arith.maximumf %48, %49 : vector<5x32xf32>
    %53 = arith.maximumf %50, %51 : vector<5x32xf32>
    %54 = arith.maximumf %52, %53 : vector<5x32xf32>
    %c15 = arith.constant 15 : index
    %c0_44 = arith.constant 0 : index
    %55 = vector.load %arg18[%c15, %c0_44] : memref<50x32xf32, #tpu.memory_space<vmem>>, vector<5x32xf32>
    tpu.vector_store %arg18[%c15, %c0_44], %54 {strides = array<i32>} : memref<50x32xf32, #tpu.memory_space<vmem>>, vector<5x32xf32>,
    %c80 = arith.constant 80 : index
    %c0_45 = arith.constant 0 : index
    %56 = tpu.strided_load %arg17[%c80, %c0_45] {strides = array<i32: 2, 1>} : memref<200x32xf32, #tpu.memory_space<vmem>>, vector<5x32xf32>
    %c81 = arith.constant 81 : index
    %c0_46 = arith.constant 0 : index
    %57 = tpu.strided_load %arg17[%c81, %c0_46] {strides = array<i32: 2, 1>} : memref<200x32xf32, #tpu.memory_space<vmem>>, vector<5x32xf32>
    %c90 = arith.constant 90 : index
    %c0_47 = arith.constant 0 : index
    %58 = tpu.strided_load %arg17[%c90, %c0_47] {strides = array<i32: 2, 1>} : memref<200x32xf32, #tpu.memory_space<vmem>>, vector<5x32xf32>
    %c91 = arith.constant 91 : index
    %c0_48 = arith.constant 0 : index
    %59 = tpu.strided_load %arg17[%c91, %c0_48] {strides = array<i32: 2, 1>} : memref<200x32xf32, #tpu.memory_space<vmem>>, vector<5x32xf32>
    %60 = arith.maximumf %56, %57 : vector<5x32xf32>
    %61 = arith.maximumf %58, %59 : vector<5x32xf32>
    %62 = arith.maximumf %60, %61 : vector<5x32xf32>
    %c20_49 = arith.constant 20 : index
    %c0_50 = arith.constant 0 : index
    %63 = vector.load %arg18[%c20_49, %c0_50] : memref<50x32xf32, #tpu.memory_space<vmem>>, vector<5x32xf32>
    tpu.vector_store %arg18[%c20_49, %c0_50], %62 {strides = array<i32>} : memref<50x32xf32, #tpu.memory_space<vmem>>, vector<5x32xf32>,
    %c100 = arith.constant 100 : index
    %c0_51 = arith.constant 0 : index
    %64 = tpu.strided_load %arg17[%c100, %c0_51] {strides = array<i32: 2, 1>} : memref<200x32xf32, #tpu.memory_space<vmem>>, vector<5x32xf32>
    %c101 = arith.constant 101 : index
    %c0_52 = arith.constant 0 : index
    %65 = tpu.strided_load %arg17[%c101, %c0_52] {strides = array<i32: 2, 1>} : memref<200x32xf32, #tpu.memory_space<vmem>>, vector<5x32xf32>
    %c110 = arith.constant 110 : index
    %c0_53 = arith.constant 0 : index
    %66 = tpu.strided_load %arg17[%c110, %c0_53] {strides = array<i32: 2, 1>} : memref<200x32xf32, #tpu.memory_space<vmem>>, vector<5x32xf32>
    %c111 = arith.constant 111 : index
    %c0_54 = arith.constant 0 : index
    %67 = tpu.strided_load %arg17[%c111, %c0_54] {strides = array<i32: 2, 1>} : memref<200x32xf32, #tpu.memory_space<vmem>>, vector<5x32xf32>
    %68 = arith.maximumf %64, %65 : vector<5x32xf32>
    %69 = arith.maximumf %66, %67 : vector<5x32xf32>
    %70 = arith.maximumf %68, %69 : vector<5x32xf32>
    %c25 = arith.constant 25 : index
    %c0_55 = arith.constant 0 : index
    %71 = vector.load %arg18[%c25, %c0_55] : memref<50x32xf32, #tpu.memory_space<vmem>>, vector<5x32xf32>
    tpu.vector_store %arg18[%c25, %c0_55], %70 {strides = array<i32>} : memref<50x32xf32, #tpu.memory_space<vmem>>, vector<5x32xf32>,
    %c120 = arith.constant 120 : index
    %c0_56 = arith.constant 0 : index
    %72 = tpu.strided_load %arg17[%c120, %c0_56] {strides = array<i32: 2, 1>} : memref<200x32xf32, #tpu.memory_space<vmem>>, vector<5x32xf32>
    %c121 = arith.constant 121 : index
    %c0_57 = arith.constant 0 : index
    %73 = tpu.strided_load %arg17[%c121, %c0_57] {strides = array<i32: 2, 1>} : memref<200x32xf32, #tpu.memory_space<vmem>>, vector<5x32xf32>
    %c130 = arith.constant 130 : index
    %c0_58 = arith.constant 0 : index
    %74 = tpu.strided_load %arg17[%c130, %c0_58] {strides = array<i32: 2, 1>} : memref<200x32xf32, #tpu.memory_space<vmem>>, vector<5x32xf32>
    %c131 = arith.constant 131 : index
    %c0_59 = arith.constant 0 : index
    %75 = tpu.strided_load %arg17[%c131, %c0_59] {strides = array<i32: 2, 1>} : memref<200x32xf32, #tpu.memory_space<vmem>>, vector<5x32xf32>
    %76 = arith.maximumf %72, %73 : vector<5x32xf32>
    %77 = arith.maximumf %74, %75 : vector<5x32xf32>
    %78 = arith.maximumf %76, %77 : vector<5x32xf32>
    %c30_60 = arith.constant 30 : index
    %c0_61 = arith.constant 0 : index
    %79 = vector.load %arg18[%c30_60, %c0_61] : memref<50x32xf32, #tpu.memory_space<vmem>>, vector<5x32xf32>
    tpu.vector_store %arg18[%c30_60, %c0_61], %78 {strides = array<i32>} : memref<50x32xf32, #tpu.memory_space<vmem>>, vector<5x32xf32>,
    %c140 = arith.constant 140 : index
    %c0_62 = arith.constant 0 : index
    %80 = tpu.strided_load %arg17[%c140, %c0_62] {strides = array<i32: 2, 1>} : memref<200x32xf32, #tpu.memory_space<vmem>>, vector<5x32xf32>
    %c141 = arith.constant 141 : index
    %c0_63 = arith.constant 0 : index
    %81 = tpu.strided_load %arg17[%c141, %c0_63] {strides = array<i32: 2, 1>} : memref<200x32xf32, #tpu.memory_space<vmem>>, vector<5x32xf32>
    %c150 = arith.constant 150 : index
    %c0_64 = arith.constant 0 : index
    %82 = tpu.strided_load %arg17[%c150, %c0_64] {strides = array<i32: 2, 1>} : memref<200x32xf32, #tpu.memory_space<vmem>>, vector<5x32xf32>
    %c151 = arith.constant 151 : index
    %c0_65 = arith.constant 0 : index
    %83 = tpu.strided_load %arg17[%c151, %c0_65] {strides = array<i32: 2, 1>} : memref<200x32xf32, #tpu.memory_space<vmem>>, vector<5x32xf32>
    %84 = arith.maximumf %80, %81 : vector<5x32xf32>
    %85 = arith.maximumf %82, %83 : vector<5x32xf32>
    %86 = arith.maximumf %84, %85 : vector<5x32xf32>
    %c35 = arith.constant 35 : index
    %c0_66 = arith.constant 0 : index
    %87 = vector.load %arg18[%c35, %c0_66] : memref<50x32xf32, #tpu.memory_space<vmem>>, vector<5x32xf32>
    tpu.vector_store %arg18[%c35, %c0_66], %86 {strides = array<i32>} : memref<50x32xf32, #tpu.memory_space<vmem>>, vector<5x32xf32>,
    %c160 = arith.constant 160 : index
    %c0_67 = arith.constant 0 : index
    %88 = tpu.strided_load %arg17[%c160, %c0_67] {strides = array<i32: 2, 1>} : memref<200x32xf32, #tpu.memory_space<vmem>>, vector<5x32xf32>
    %c161 = arith.constant 161 : index
    %c0_68 = arith.constant 0 : index
    %89 = tpu.strided_load %arg17[%c161, %c0_68] {strides = array<i32: 2, 1>} : memref<200x32xf32, #tpu.memory_space<vmem>>, vector<5x32xf32>
    %c170 = arith.constant 170 : index
    %c0_69 = arith.constant 0 : index
    %90 = tpu.strided_load %arg17[%c170, %c0_69] {strides = array<i32: 2, 1>} : memref<200x32xf32, #tpu.memory_space<vmem>>, vector<5x32xf32>
    %c171 = arith.constant 171 : index
    %c0_70 = arith.constant 0 : index
    %91 = tpu.strided_load %arg17[%c171, %c0_70] {strides = array<i32: 2, 1>} : memref<200x32xf32, #tpu.memory_space<vmem>>, vector<5x32xf32>
    %92 = arith.maximumf %88, %89 : vector<5x32xf32>
    %93 = arith.maximumf %90, %91 : vector<5x32xf32>
    %94 = arith.maximumf %92, %93 : vector<5x32xf32>
    %c40_71 = arith.constant 40 : index
    %c0_72 = arith.constant 0 : index
    %95 = vector.load %arg18[%c40_71, %c0_72] : memref<50x32xf32, #tpu.memory_space<vmem>>, vector<5x32xf32>
    tpu.vector_store %arg18[%c40_71, %c0_72], %94 {strides = array<i32>} : memref<50x32xf32, #tpu.memory_space<vmem>>, vector<5x32xf32>,
    %c180 = arith.constant 180 : index
    %c0_73 = arith.constant 0 : index
    %96 = tpu.strided_load %arg17[%c180, %c0_73] {strides = array<i32: 2, 1>} : memref<200x32xf32, #tpu.memory_space<vmem>>, vector<5x32xf32>
    %c181 = arith.constant 181 : index
    %c0_74 = arith.constant 0 : index
    %97 = tpu.strided_load %arg17[%c181, %c0_74] {strides = array<i32: 2, 1>} : memref<200x32xf32, #tpu.memory_space<vmem>>, vector<5x32xf32>
    %c190 = arith.constant 190 : index
    %c0_75 = arith.constant 0 : index
    %98 = tpu.strided_load %arg17[%c190, %c0_75] {strides = array<i32: 2, 1>} : memref<200x32xf32, #tpu.memory_space<vmem>>, vector<5x32xf32>
    %c191 = arith.constant 191 : index
    %c0_76 = arith.constant 0 : index
    %99 = tpu.strided_load %arg17[%c191, %c0_76] {strides = array<i32: 2, 1>} : memref<200x32xf32, #tpu.memory_space<vmem>>, vector<5x32xf32>
    %100 = arith.maximumf %96, %97 : vector<5x32xf32>
    %101 = arith.maximumf %98, %99 : vector<5x32xf32>
    %102 = arith.maximumf %100, %101 : vector<5x32xf32>
    %c45 = arith.constant 45 : index
    %c0_77 = arith.constant 0 : index
    %103 = vector.load %arg18[%c45, %c0_77] : memref<50x32xf32, #tpu.memory_space<vmem>>, vector<5x32xf32>
    tpu.vector_store %arg18[%c45, %c0_77], %102 {strides = array<i32>} : memref<50x32xf32, #tpu.memory_space<vmem>>, vector<5x32xf32>,
    %c0_78 = arith.constant 0 : index
    %c0_79 = arith.constant 0 : index
    %c0_80 = arith.constant 0 : index
    %104 = vector.load %arg8[%c0_78, %c0_79, %c0_80] : memref<8x32x64xf32, #tpu.memory_space<vmem>>, vector<1x32x64xf32>
    %105 = vector.shape_cast %104 : vector<1x32x64xf32> to vector<32x64xf32>
    %c1_81 = arith.constant 1 : index
    %c0_82 = arith.constant 0 : index
    %c0_83 = arith.constant 0 : index
    %106 = vector.load %arg8[%c1_81, %c0_82, %c0_83] : memref<8x32x64xf32, #tpu.memory_space<vmem>>, vector<1x32x64xf32>
    %107 = vector.shape_cast %106 : vector<1x32x64xf32> to vector<32x64xf32>
    %c2 = arith.constant 2 : index
    %c0_84 = arith.constant 0 : index
    %c0_85 = arith.constant 0 : index
    %108 = vector.load %arg8[%c2, %c0_84, %c0_85] : memref<8x32x64xf32, #tpu.memory_space<vmem>>, vector<1x32x64xf32>
    %109 = vector.shape_cast %108 : vector<1x32x64xf32> to vector<32x64xf32>
    %c3 = arith.constant 3 : index
    %c0_86 = arith.constant 0 : index
    %c0_87 = arith.constant 0 : index
    %110 = vector.load %arg8[%c3, %c0_86, %c0_87] : memref<8x32x64xf32, #tpu.memory_space<vmem>>, vector<1x32x64xf32>
    %111 = vector.shape_cast %110 : vector<1x32x64xf32> to vector<32x64xf32>
    %c4 = arith.constant 4 : index
    %c0_88 = arith.constant 0 : index
    %c0_89 = arith.constant 0 : index
    %112 = vector.load %arg8[%c4, %c0_88, %c0_89] : memref<8x32x64xf32, #tpu.memory_space<vmem>>, vector<1x32x64xf32>
    %113 = vector.shape_cast %112 : vector<1x32x64xf32> to vector<32x64xf32>
    %c5_90 = arith.constant 5 : index
    %c0_91 = arith.constant 0 : index
    %c0_92 = arith.constant 0 : index
    %114 = vector.load %arg8[%c5_90, %c0_91, %c0_92] : memref<8x32x64xf32, #tpu.memory_space<vmem>>, vector<1x32x64xf32>
    %115 = vector.shape_cast %114 : vector<1x32x64xf32> to vector<32x64xf32>
    %c6 = arith.constant 6 : index
    %c0_93 = arith.constant 0 : index
    %c0_94 = arith.constant 0 : index
    %116 = vector.load %arg8[%c6, %c0_93, %c0_94] : memref<8x32x64xf32, #tpu.memory_space<vmem>>, vector<1x32x64xf32>
    %117 = vector.shape_cast %116 : vector<1x32x64xf32> to vector<32x64xf32>
    %c7 = arith.constant 7 : index
    %c0_95 = arith.constant 0 : index
    %c0_96 = arith.constant 0 : index
    %118 = vector.load %arg8[%c7, %c0_95, %c0_96] : memref<8x32x64xf32, #tpu.memory_space<vmem>>, vector<1x32x64xf32>
    %119 = vector.shape_cast %118 : vector<1x32x64xf32> to vector<32x64xf32>
    %c0_97 = arith.constant 0 : index
    %c0_98 = arith.constant 0 : index
    %120 = vector.load %arg9[%c0_97, %c0_98] : memref<1x64xf32, #tpu.memory_space<vmem>>, vector<1x64xf32>
    %c0_99 = arith.constant 0 : index
    %c0_100 = arith.constant 0 : index
    %121 = vector.load %arg18[%c0_99, %c0_100] : memref<50x32xf32, #tpu.memory_space<vmem>>, vector<4x32xf32>
    %cst_101 = arith.constant dense<0.000000e+00> : vector<4x64xf32>
    %122 = tpu.matmul %121, %105, %cst_101 {dimension_numbers = #tpu.dot_dimension_numbers<[1], [0], [0], [1], [0, 0, 1, 1], [], []>} : vector<4x32xf32>, vector<32x64xf32>, vector<4x64xf32> -> vector<4x64xf32>
    %123 = vector.broadcast %120 : vector<1x64xf32> to vector<4x64xf32>
    %124 = arith.addf %123, %122 : vector<4x64xf32>
    %c1_102 = arith.constant 1 : index
    %c0_103 = arith.constant 0 : index
    %125 = vector.load %arg18[%c1_102, %c0_103] : memref<50x32xf32, #tpu.memory_space<vmem>>, vector<4x32xf32>
    %cst_104 = arith.constant dense<0.000000e+00> : vector<4x64xf32>
    %126 = tpu.matmul %125, %107, %cst_104 {dimension_numbers = #tpu.dot_dimension_numbers<[1], [0], [0], [1], [0, 0, 1, 1], [], []>} : vector<4x32xf32>, vector<32x64xf32>, vector<4x64xf32> -> vector<4x64xf32>
    %127 = arith.addf %124, %126 : vector<4x64xf32>
    %c5_105 = arith.constant 5 : index
    %c0_106 = arith.constant 0 : index
    %128 = vector.load %arg18[%c5_105, %c0_106] : memref<50x32xf32, #tpu.memory_space<vmem>>, vector<4x32xf32>
    %cst_107 = arith.constant dense<0.000000e+00> : vector<4x64xf32>
    %129 = tpu.matmul %128, %109, %cst_107 {dimension_numbers = #tpu.dot_dimension_numbers<[1], [0], [0], [1], [0, 0, 1, 1], [], []>} : vector<4x32xf32>, vector<32x64xf32>, vector<4x64xf32> -> vector<4x64xf32>
    %130 = arith.addf %127, %129 : vector<4x64xf32>
    %c6_108 = arith.constant 6 : index
    %c0_109 = arith.constant 0 : index
    %131 = vector.load %arg18[%c6_108, %c0_109] : memref<50x32xf32, #tpu.memory_space<vmem>>, vector<4x32xf32>
    %cst_110 = arith.constant dense<0.000000e+00> : vector<4x64xf32>
    %132 = tpu.matmul %131, %111, %cst_110 {dimension_numbers = #tpu.dot_dimension_numbers<[1], [0], [0], [1], [0, 0, 1, 1], [], []>} : vector<4x32xf32>, vector<32x64xf32>, vector<4x64xf32> -> vector<4x64xf32>
    %133 = arith.addf %130, %132 : vector<4x64xf32>
    %c10_111 = arith.constant 10 : index
    %c0_112 = arith.constant 0 : index
    %134 = vector.load %arg18[%c10_111, %c0_112] : memref<50x32xf32, #tpu.memory_space<vmem>>, vector<4x32xf32>
    %cst_113 = arith.constant dense<0.000000e+00> : vector<4x64xf32>
    %135 = tpu.matmul %134, %113, %cst_113 {dimension_numbers = #tpu.dot_dimension_numbers<[1], [0], [0], [1], [0, 0, 1, 1], [], []>} : vector<4x32xf32>, vector<32x64xf32>, vector<4x64xf32> -> vector<4x64xf32>
    %136 = arith.addf %133, %135 : vector<4x64xf32>
    %c11_114 = arith.constant 11 : index
    %c0_115 = arith.constant 0 : index
    %137 = vector.load %arg18[%c11_114, %c0_115] : memref<50x32xf32, #tpu.memory_space<vmem>>, vector<4x32xf32>
    %cst_116 = arith.constant dense<0.000000e+00> : vector<4x64xf32>
    %138 = tpu.matmul %137, %115, %cst_116 {dimension_numbers = #tpu.dot_dimension_numbers<[1], [0], [0], [1], [0, 0, 1, 1], [], []>} : vector<4x32xf32>, vector<32x64xf32>, vector<4x64xf32> -> vector<4x64xf32>
    %139 = arith.addf %136, %138 : vector<4x64xf32>
    %c15_117 = arith.constant 15 : index
    %c0_118 = arith.constant 0 : index
    %140 = vector.load %arg18[%c15_117, %c0_118] : memref<50x32xf32, #tpu.memory_space<vmem>>, vector<4x32xf32>
    %cst_119 = arith.constant dense<0.000000e+00> : vector<4x64xf32>
    %141 = tpu.matmul %140, %117, %cst_119 {dimension_numbers = #tpu.dot_dimension_numbers<[1], [0], [0], [1], [0, 0, 1, 1], [], []>} : vector<4x32xf32>, vector<32x64xf32>, vector<4x64xf32> -> vector<4x64xf32>
    %142 = arith.addf %139, %141 : vector<4x64xf32>
    %c16 = arith.constant 16 : index
    %c0_120 = arith.constant 0 : index
    %143 = vector.load %arg18[%c16, %c0_120] : memref<50x32xf32, #tpu.memory_space<vmem>>, vector<4x32xf32>
    %cst_121 = arith.constant dense<0.000000e+00> : vector<4x64xf32>
    %144 = tpu.matmul %143, %119, %cst_121 {dimension_numbers = #tpu.dot_dimension_numbers<[1], [0], [0], [1], [0, 0, 1, 1], [], []>} : vector<4x32xf32>, vector<32x64xf32>, vector<4x64xf32> -> vector<4x64xf32>
    %145 = arith.addf %142, %144 : vector<4x64xf32>
    %c0_122 = arith.constant 0 : index
    %c0_123 = arith.constant 0 : index
    %146 = vector.load %arg19[%c0_122, %c0_123] : memref<16x64xf32, #tpu.memory_space<vmem>>, vector<4x64xf32>
    tpu.vector_store %arg19[%c0_122, %c0_123], %145 {strides = array<i32>} : memref<16x64xf32, #tpu.memory_space<vmem>>, vector<4x64xf32>,
    %c5_124 = arith.constant 5 : index
    %c0_125 = arith.constant 0 : index
    %147 = vector.load %arg18[%c5_124, %c0_125] : memref<50x32xf32, #tpu.memory_space<vmem>>, vector<4x32xf32>
    %cst_126 = arith.constant dense<0.000000e+00> : vector<4x64xf32>
    %148 = tpu.matmul %147, %105, %cst_126 {dimension_numbers = #tpu.dot_dimension_numbers<[1], [0], [0], [1], [0, 0, 1, 1], [], []>} : vector<4x32xf32>, vector<32x64xf32>, vector<4x64xf32> -> vector<4x64xf32>
    %149 = vector.broadcast %120 : vector<1x64xf32> to vector<4x64xf32>
    %150 = arith.addf %149, %148 : vector<4x64xf32>
    %c6_127 = arith.constant 6 : index
    %c0_128 = arith.constant 0 : index
    %151 = vector.load %arg18[%c6_127, %c0_128] : memref<50x32xf32, #tpu.memory_space<vmem>>, vector<4x32xf32>
    %cst_129 = arith.constant dense<0.000000e+00> : vector<4x64xf32>
    %152 = tpu.matmul %151, %107, %cst_129 {dimension_numbers = #tpu.dot_dimension_numbers<[1], [0], [0], [1], [0, 0, 1, 1], [], []>} : vector<4x32xf32>, vector<32x64xf32>, vector<4x64xf32> -> vector<4x64xf32>
    %153 = arith.addf %150, %152 : vector<4x64xf32>
    %c10_130 = arith.constant 10 : index
    %c0_131 = arith.constant 0 : index
    %154 = vector.load %arg18[%c10_130, %c0_131] : memref<50x32xf32, #tpu.memory_space<vmem>>, vector<4x32xf32>
    %cst_132 = arith.constant dense<0.000000e+00> : vector<4x64xf32>
    %155 = tpu.matmul %154, %109, %cst_132 {dimension_numbers = #tpu.dot_dimension_numbers<[1], [0], [0], [1], [0, 0, 1, 1], [], []>} : vector<4x32xf32>, vector<32x64xf32>, vector<4x64xf32> -> vector<4x64xf32>
    %156 = arith.addf %153, %155 : vector<4x64xf32>
    %c11_133 = arith.constant 11 : index
    %c0_134 = arith.constant 0 : index
    %157 = vector.load %arg18[%c11_133, %c0_134] : memref<50x32xf32, #tpu.memory_space<vmem>>, vector<4x32xf32>
    %cst_135 = arith.constant dense<0.000000e+00> : vector<4x64xf32>
    %158 = tpu.matmul %157, %111, %cst_135 {dimension_numbers = #tpu.dot_dimension_numbers<[1], [0], [0], [1], [0, 0, 1, 1], [], []>} : vector<4x32xf32>, vector<32x64xf32>, vector<4x64xf32> -> vector<4x64xf32>
    %159 = arith.addf %156, %158 : vector<4x64xf32>
    %c15_136 = arith.constant 15 : index
    %c0_137 = arith.constant 0 : index
    %160 = vector.load %arg18[%c15_136, %c0_137] : memref<50x32xf32, #tpu.memory_space<vmem>>, vector<4x32xf32>
    %cst_138 = arith.constant dense<0.000000e+00> : vector<4x64xf32>
    %161 = tpu.matmul %160, %113, %cst_138 {dimension_numbers = #tpu.dot_dimension_numbers<[1], [0], [0], [1], [0, 0, 1, 1], [], []>} : vector<4x32xf32>, vector<32x64xf32>, vector<4x64xf32> -> vector<4x64xf32>
    %162 = arith.addf %159, %161 : vector<4x64xf32>
    %c16_139 = arith.constant 16 : index
    %c0_140 = arith.constant 0 : index
    %163 = vector.load %arg18[%c16_139, %c0_140] : memref<50x32xf32, #tpu.memory_space<vmem>>, vector<4x32xf32>
    %cst_141 = arith.constant dense<0.000000e+00> : vector<4x64xf32>
    %164 = tpu.matmul %163, %115, %cst_141 {dimension_numbers = #tpu.dot_dimension_numbers<[1], [0], [0], [1], [0, 0, 1, 1], [], []>} : vector<4x32xf32>, vector<32x64xf32>, vector<4x64xf32> -> vector<4x64xf32>
    %165 = arith.addf %162, %164 : vector<4x64xf32>
    %c20_142 = arith.constant 20 : index
    %c0_143 = arith.constant 0 : index
    %166 = vector.load %arg18[%c20_142, %c0_143] : memref<50x32xf32, #tpu.memory_space<vmem>>, vector<4x32xf32>
    %cst_144 = arith.constant dense<0.000000e+00> : vector<4x64xf32>
    %167 = tpu.matmul %166, %117, %cst_144 {dimension_numbers = #tpu.dot_dimension_numbers<[1], [0], [0], [1], [0, 0, 1, 1], [], []>} : vector<4x32xf32>, vector<32x64xf32>, vector<4x64xf32> -> vector<4x64xf32>
    %168 = arith.addf %165, %167 : vector<4x64xf32>
    %c21_145 = arith.constant 21 : index
    %c0_146 = arith.constant 0 : index
    %169 = vector.load %arg18[%c21_145, %c0_146] : memref<50x32xf32, #tpu.memory_space<vmem>>, vector<4x32xf32>
    %cst_147 = arith.constant dense<0.000000e+00> : vector<4x64xf32>
    %170 = tpu.matmul %169, %119, %cst_147 {dimension_numbers = #tpu.dot_dimension_numbers<[1], [0], [0], [1], [0, 0, 1, 1], [], []>} : vector<4x32xf32>, vector<32x64xf32>, vector<4x64xf32> -> vector<4x64xf32>
    %171 = arith.addf %168, %170 : vector<4x64xf32>
    %c4_148 = arith.constant 4 : index
    %c0_149 = arith.constant 0 : index
    %172 = vector.load %arg19[%c4_148, %c0_149] : memref<16x64xf32, #tpu.memory_space<vmem>>, vector<4x64xf32>
    tpu.vector_store %arg19[%c4_148, %c0_149], %171 {strides = array<i32>} : memref<16x64xf32, #tpu.memory_space<vmem>>, vector<4x64xf32>,
    %c25_150 = arith.constant 25 : index
    %c0_151 = arith.constant 0 : index
    %173 = vector.load %arg18[%c25_150, %c0_151] : memref<50x32xf32, #tpu.memory_space<vmem>>, vector<4x32xf32>
    %cst_152 = arith.constant dense<0.000000e+00> : vector<4x64xf32>
    %174 = tpu.matmul %173, %105, %cst_152 {dimension_numbers = #tpu.dot_dimension_numbers<[1], [0], [0], [1], [0, 0, 1, 1], [], []>} : vector<4x32xf32>, vector<32x64xf32>, vector<4x64xf32> -> vector<4x64xf32>
    %175 = vector.broadcast %120 : vector<1x64xf32> to vector<4x64xf32>
    %176 = arith.addf %175, %174 : vector<4x64xf32>
    %c26 = arith.constant 26 : index
    %c0_153 = arith.constant 0 : index
    %177 = vector.load %arg18[%c26, %c0_153] : memref<50x32xf32, #tpu.memory_space<vmem>>, vector<4x32xf32>
    %cst_154 = arith.constant dense<0.000000e+00> : vector<4x64xf32>
    %178 = tpu.matmul %177, %107, %cst_154 {dimension_numbers = #tpu.dot_dimension_numbers<[1], [0], [0], [1], [0, 0, 1, 1], [], []>} : vector<4x32xf32>, vector<32x64xf32>, vector<4x64xf32> -> vector<4x64xf32>
    %179 = arith.addf %176, %178 : vector<4x64xf32>
    %c30_155 = arith.constant 30 : index
    %c0_156 = arith.constant 0 : index
    %180 = vector.load %arg18[%c30_155, %c0_156] : memref<50x32xf32, #tpu.memory_space<vmem>>, vector<4x32xf32>
    %cst_157 = arith.constant dense<0.000000e+00> : vector<4x64xf32>
    %181 = tpu.matmul %180, %109, %cst_157 {dimension_numbers = #tpu.dot_dimension_numbers<[1], [0], [0], [1], [0, 0, 1, 1], [], []>} : vector<4x32xf32>, vector<32x64xf32>, vector<4x64xf32> -> vector<4x64xf32>
    %182 = arith.addf %179, %181 : vector<4x64xf32>
    %c31_158 = arith.constant 31 : index
    %c0_159 = arith.constant 0 : index
    %183 = vector.load %arg18[%c31_158, %c0_159] : memref<50x32xf32, #tpu.memory_space<vmem>>, vector<4x32xf32>
    %cst_160 = arith.constant dense<0.000000e+00> : vector<4x64xf32>
    %184 = tpu.matmul %183, %111, %cst_160 {dimension_numbers = #tpu.dot_dimension_numbers<[1], [0], [0], [1], [0, 0, 1, 1], [], []>} : vector<4x32xf32>, vector<32x64xf32>, vector<4x64xf32> -> vector<4x64xf32>
    %185 = arith.addf %182, %184 : vector<4x64xf32>
    %c35_161 = arith.constant 35 : index
    %c0_162 = arith.constant 0 : index
    %186 = vector.load %arg18[%c35_161, %c0_162] : memref<50x32xf32, #tpu.memory_space<vmem>>, vector<4x32xf32>
    %cst_163 = arith.constant dense<0.000000e+00> : vector<4x64xf32>
    %187 = tpu.matmul %186, %113, %cst_163 {dimension_numbers = #tpu.dot_dimension_numbers<[1], [0], [0], [1], [0, 0, 1, 1], [], []>} : vector<4x32xf32>, vector<32x64xf32>, vector<4x64xf32> -> vector<4x64xf32>
    %188 = arith.addf %185, %187 : vector<4x64xf32>
    %c36 = arith.constant 36 : index
    %c0_164 = arith.constant 0 : index
    %189 = vector.load %arg18[%c36, %c0_164] : memref<50x32xf32, #tpu.memory_space<vmem>>, vector<4x32xf32>
    %cst_165 = arith.constant dense<0.000000e+00> : vector<4x64xf32>
    %190 = tpu.matmul %189, %115, %cst_165 {dimension_numbers = #tpu.dot_dimension_numbers<[1], [0], [0], [1], [0, 0, 1, 1], [], []>} : vector<4x32xf32>, vector<32x64xf32>, vector<4x64xf32> -> vector<4x64xf32>
    %191 = arith.addf %188, %190 : vector<4x64xf32>
    %c40_166 = arith.constant 40 : index
    %c0_167 = arith.constant 0 : index
    %192 = vector.load %arg18[%c40_166, %c0_167] : memref<50x32xf32, #tpu.memory_space<vmem>>, vector<4x32xf32>
    %cst_168 = arith.constant dense<0.000000e+00> : vector<4x64xf32>
    %193 = tpu.matmul %192, %117, %cst_168 {dimension_numbers = #tpu.dot_dimension_numbers<[1], [0], [0], [1], [0, 0, 1, 1], [], []>} : vector<4x32xf32>, vector<32x64xf32>, vector<4x64xf32> -> vector<4x64xf32>
    %194 = arith.addf %191, %193 : vector<4x64xf32>
    %c41_169 = arith.constant 41 : index
    %c0_170 = arith.constant 0 : index
    %195 = vector.load %arg18[%c41_169, %c0_170] : memref<50x32xf32, #tpu.memory_space<vmem>>, vector<4x32xf32>
    %cst_171 = arith.constant dense<0.000000e+00> : vector<4x64xf32>
    %196 = tpu.matmul %195, %119, %cst_171 {dimension_numbers = #tpu.dot_dimension_numbers<[1], [0], [0], [1], [0, 0, 1, 1], [], []>} : vector<4x32xf32>, vector<32x64xf32>, vector<4x64xf32> -> vector<4x64xf32>
    %197 = arith.addf %194, %196 : vector<4x64xf32>
    %c8 = arith.constant 8 : index
    %c0_172 = arith.constant 0 : index
    %198 = vector.load %arg19[%c8, %c0_172] : memref<16x64xf32, #tpu.memory_space<vmem>>, vector<4x64xf32>
    tpu.vector_store %arg19[%c8, %c0_172], %197 {strides = array<i32>} : memref<16x64xf32, #tpu.memory_space<vmem>>, vector<4x64xf32>,
    %c30_173 = arith.constant 30 : index
    %c0_174 = arith.constant 0 : index
    %199 = vector.load %arg18[%c30_173, %c0_174] : memref<50x32xf32, #tpu.memory_space<vmem>>, vector<4x32xf32>
    %cst_175 = arith.constant dense<0.000000e+00> : vector<4x64xf32>
    %200 = tpu.matmul %199, %105, %cst_175 {dimension_numbers = #tpu.dot_dimension_numbers<[1], [0], [0], [1], [0, 0, 1, 1], [], []>} : vector<4x32xf32>, vector<32x64xf32>, vector<4x64xf32> -> vector<4x64xf32>
    %201 = vector.broadcast %120 : vector<1x64xf32> to vector<4x64xf32>
    %202 = arith.addf %201, %200 : vector<4x64xf32>
    %c31_176 = arith.constant 31 : index
    %c0_177 = arith.constant 0 : index
    %203 = vector.load %arg18[%c31_176, %c0_177] : memref<50x32xf32, #tpu.memory_space<vmem>>, vector<4x32xf32>
    %cst_178 = arith.constant dense<0.000000e+00> : vector<4x64xf32>
    %204 = tpu.matmul %203, %107, %cst_178 {dimension_numbers = #tpu.dot_dimension_numbers<[1], [0], [0], [1], [0, 0, 1, 1], [], []>} : vector<4x32xf32>, vector<32x64xf32>, vector<4x64xf32> -> vector<4x64xf32>
    %205 = arith.addf %202, %204 : vector<4x64xf32>
    %c35_179 = arith.constant 35 : index
    %c0_180 = arith.constant 0 : index
    %206 = vector.load %arg18[%c35_179, %c0_180] : memref<50x32xf32, #tpu.memory_space<vmem>>, vector<4x32xf32>
    %cst_181 = arith.constant dense<0.000000e+00> : vector<4x64xf32>
    %207 = tpu.matmul %206, %109, %cst_181 {dimension_numbers = #tpu.dot_dimension_numbers<[1], [0], [0], [1], [0, 0, 1, 1], [], []>} : vector<4x32xf32>, vector<32x64xf32>, vector<4x64xf32> -> vector<4x64xf32>
    %208 = arith.addf %205, %207 : vector<4x64xf32>
    %c36_182 = arith.constant 36 : index
    %c0_183 = arith.constant 0 : index
    %209 = vector.load %arg18[%c36_182, %c0_183] : memref<50x32xf32, #tpu.memory_space<vmem>>, vector<4x32xf32>
    %cst_184 = arith.constant dense<0.000000e+00> : vector<4x64xf32>
    %210 = tpu.matmul %209, %111, %cst_184 {dimension_numbers = #tpu.dot_dimension_numbers<[1], [0], [0], [1], [0, 0, 1, 1], [], []>} : vector<4x32xf32>, vector<32x64xf32>, vector<4x64xf32> -> vector<4x64xf32>
    %211 = arith.addf %208, %210 : vector<4x64xf32>
    %c40_185 = arith.constant 40 : index
    %c0_186 = arith.constant 0 : index
    %212 = vector.load %arg18[%c40_185, %c0_186] : memref<50x32xf32, #tpu.memory_space<vmem>>, vector<4x32xf32>
    %cst_187 = arith.constant dense<0.000000e+00> : vector<4x64xf32>
    %213 = tpu.matmul %212, %113, %cst_187 {dimension_numbers = #tpu.dot_dimension_numbers<[1], [0], [0], [1], [0, 0, 1, 1], [], []>} : vector<4x32xf32>, vector<32x64xf32>, vector<4x64xf32> -> vector<4x64xf32>
    %214 = arith.addf %211, %213 : vector<4x64xf32>
    %c41_188 = arith.constant 41 : index
    %c0_189 = arith.constant 0 : index
    %215 = vector.load %arg18[%c41_188, %c0_189] : memref<50x32xf32, #tpu.memory_space<vmem>>, vector<4x32xf32>
    %cst_190 = arith.constant dense<0.000000e+00> : vector<4x64xf32>
    %216 = tpu.matmul %215, %115, %cst_190 {dimension_numbers = #tpu.dot_dimension_numbers<[1], [0], [0], [1], [0, 0, 1, 1], [], []>} : vector<4x32xf32>, vector<32x64xf32>, vector<4x64xf32> -> vector<4x64xf32>
    %217 = arith.addf %214, %216 : vector<4x64xf32>
    %c45_191 = arith.constant 45 : index
    %c0_192 = arith.constant 0 : index
    %218 = vector.load %arg18[%c45_191, %c0_192] : memref<50x32xf32, #tpu.memory_space<vmem>>, vector<4x32xf32>
    %cst_193 = arith.constant dense<0.000000e+00> : vector<4x64xf32>
    %219 = tpu.matmul %218, %117, %cst_193 {dimension_numbers = #tpu.dot_dimension_numbers<[1], [0], [0], [1], [0, 0, 1, 1], [], []>} : vector<4x32xf32>, vector<32x64xf32>, vector<4x64xf32> -> vector<4x64xf32>
    %220 = arith.addf %217, %219 : vector<4x64xf32>
    %c46 = arith.constant 46 : index
    %c0_194 = arith.constant 0 : index
    %221 = vector.load %arg18[%c46, %c0_194] : memref<50x32xf32, #tpu.memory_space<vmem>>, vector<4x32xf32>
    %cst_195 = arith.constant dense<0.000000e+00> : vector<4x64xf32>
    %222 = tpu.matmul %221, %119, %cst_195 {dimension_numbers = #tpu.dot_dimension_numbers<[1], [0], [0], [1], [0, 0, 1, 1], [], []>} : vector<4x32xf32>, vector<32x64xf32>, vector<4x64xf32> -> vector<4x64xf32>
    %223 = arith.addf %220, %222 : vector<4x64xf32>
    %c12 = arith.constant 12 : index
    %c0_196 = arith.constant 0 : index
    %224 = vector.load %arg19[%c12, %c0_196] : memref<16x64xf32, #tpu.memory_space<vmem>>, vector<4x64xf32>
    tpu.vector_store %arg19[%c12, %c0_196], %223 {strides = array<i32>} : memref<16x64xf32, #tpu.memory_space<vmem>>, vector<4x64xf32>,
    %c0_197 = arith.constant 0 : index
    %c0_198 = arith.constant 0 : index
    %225 = tpu.strided_load %arg19[%c0_197, %c0_198] {strides = array<i32: 8, 1>} : memref<16x64xf32, #tpu.memory_space<vmem>>, vector<2x64xf32>
    %c1_199 = arith.constant 1 : index
    %c0_200 = arith.constant 0 : index
    %226 = tpu.strided_load %arg19[%c1_199, %c0_200] {strides = array<i32: 8, 1>} : memref<16x64xf32, #tpu.memory_space<vmem>>, vector<2x64xf32>
    %227 = arith.maximumf %225, %226 : vector<2x64xf32>
    %c4_201 = arith.constant 4 : index
    %c0_202 = arith.constant 0 : index
    %228 = tpu.strided_load %arg19[%c4_201, %c0_202] {strides = array<i32: 8, 1>} : memref<16x64xf32, #tpu.memory_space<vmem>>, vector<2x64xf32>
    %c5_203 = arith.constant 5 : index
    %c0_204 = arith.constant 0 : index
    %229 = tpu.strided_load %arg19[%c5_203, %c0_204] {strides = array<i32: 8, 1>} : memref<16x64xf32, #tpu.memory_space<vmem>>, vector<2x64xf32>
    %230 = arith.maximumf %228, %229 : vector<2x64xf32>
    %231 = arith.maximumf %227, %230 : vector<2x64xf32>
    %cst_205 = arith.constant 0.000000e+00 : f32
    %232 = vector.broadcast %cst_205 : f32 to vector<2x64xf32>
    %233 = arith.maximumf %231, %232 : vector<2x64xf32>
    %c2_206 = arith.constant 2 : index
    %c0_207 = arith.constant 0 : index
    %234 = tpu.strided_load %arg19[%c2_206, %c0_207] {strides = array<i32: 8, 1>} : memref<16x64xf32, #tpu.memory_space<vmem>>, vector<2x64xf32>
    %c3_208 = arith.constant 3 : index
    %c0_209 = arith.constant 0 : index
    %235 = tpu.strided_load %arg19[%c3_208, %c0_209] {strides = array<i32: 8, 1>} : memref<16x64xf32, #tpu.memory_space<vmem>>, vector<2x64xf32>
    %236 = arith.maximumf %234, %235 : vector<2x64xf32>
    %c6_210 = arith.constant 6 : index
    %c0_211 = arith.constant 0 : index
    %237 = tpu.strided_load %arg19[%c6_210, %c0_211] {strides = array<i32: 8, 1>} : memref<16x64xf32, #tpu.memory_space<vmem>>, vector<2x64xf32>
    %c7_212 = arith.constant 7 : index
    %c0_213 = arith.constant 0 : index
    %238 = tpu.strided_load %arg19[%c7_212, %c0_213] {strides = array<i32: 8, 1>} : memref<16x64xf32, #tpu.memory_space<vmem>>, vector<2x64xf32>
    %239 = arith.maximumf %237, %238 : vector<2x64xf32>
    %240 = arith.maximumf %236, %239 : vector<2x64xf32>
    %cst_214 = arith.constant 0.000000e+00 : f32
    %241 = vector.broadcast %cst_214 : f32 to vector<2x64xf32>
    %242 = arith.maximumf %240, %241 : vector<2x64xf32>
    %c0_215 = arith.constant 0 : index
    %c0_216 = arith.constant 0 : index
    %243 = vector.load %arg10[%c0_215, %c0_216] : memref<64x128xf32, #tpu.memory_space<vmem>>, vector<64x128xf32>
    %cst_217 = arith.constant dense<0.000000e+00> : vector<2x128xf32>
    %244 = tpu.matmul %14, %243, %cst_217 {dimension_numbers = #tpu.dot_dimension_numbers<[1], [0], [0], [1], [0, 0, 1, 1], [], []>} : vector<2x64xf32>, vector<64x128xf32>, vector<2x128xf32> -> vector<2x128xf32>
    %c0_218 = arith.constant 0 : index
    %c0_219 = arith.constant 0 : index
    %245 = vector.load %arg11[%c0_218, %c0_219] : memref<64x128xf32, #tpu.memory_space<vmem>>, vector<64x128xf32>
    %cst_220 = arith.constant dense<0.000000e+00> : vector<2x128xf32>
    %246 = tpu.matmul %233, %245, %cst_220 {dimension_numbers = #tpu.dot_dimension_numbers<[1], [0], [0], [1], [0, 0, 1, 1], [], []>} : vector<2x64xf32>, vector<64x128xf32>, vector<2x128xf32> -> vector<2x128xf32>
    %247 = arith.addf %244, %246 : vector<2x128xf32>
    %c0_221 = arith.constant 0 : index
    %c0_222 = arith.constant 0 : index
    %248 = vector.load %arg12[%c0_221, %c0_222] : memref<64x128xf32, #tpu.memory_space<vmem>>, vector<64x128xf32>
    %cst_223 = arith.constant dense<0.000000e+00> : vector<2x128xf32>
    %249 = tpu.matmul %242, %248, %cst_223 {dimension_numbers = #tpu.dot_dimension_numbers<[1], [0], [0], [1], [0, 0, 1, 1], [], []>} : vector<2x64xf32>, vector<64x128xf32>, vector<2x128xf32> -> vector<2x128xf32>
    %250 = arith.addf %247, %249 : vector<2x128xf32>
    %c0_224 = arith.constant 0 : index
    %c0_225 = arith.constant 0 : index
    %251 = vector.load %arg13[%c0_224, %c0_225] : memref<1x128xf32, #tpu.memory_space<vmem>>, vector<1x128xf32>
    %252 = vector.broadcast %251 : vector<1x128xf32> to vector<2x128xf32>
    %253 = arith.addf %250, %252 : vector<2x128xf32>
    %cst_226 = arith.constant 0.000000e+00 : f32
    %254 = vector.broadcast %cst_226 : f32 to vector<2x128xf32>
    %255 = arith.maximumf %253, %254 : vector<2x128xf32>
    %c0_227 = arith.constant 0 : index
    %c0_228 = arith.constant 0 : index
    %256 = vector.load %arg14[%c0_227, %c0_228] : memref<128x5xf32, #tpu.memory_space<vmem>>, vector<128x5xf32>
    %cst_229 = arith.constant dense<0.000000e+00> : vector<2x5xf32>
    %257 = tpu.matmul %255, %256, %cst_229 {dimension_numbers = #tpu.dot_dimension_numbers<[1], [0], [0], [1], [0, 0, 1, 1], [], []>} : vector<2x128xf32>, vector<128x5xf32>, vector<2x5xf32> -> vector<2x5xf32>
    %c0_230 = arith.constant 0 : index
    %c0_231 = arith.constant 0 : index
    %258 = vector.load %arg15[%c0_230, %c0_231] : memref<1x5xf32, #tpu.memory_space<vmem>>, vector<1x5xf32>
    %259 = vector.broadcast %258 : vector<1x5xf32> to vector<2x5xf32>
    %260 = arith.addf %257, %259 : vector<2x5xf32>
    %c0_232 = arith.constant 0 : index
    %c0_233 = arith.constant 0 : index
    %261 = vector.load %arg16[%c0_232, %c0_233] : memref<2x5xf32, #tpu.memory_space<vmem>>, vector<2x5xf32>
    tpu.vector_store %arg16[%c0_232, %c0_233], %260 {strides = array<i32>} : memref<2x5xf32, #tpu.memory_space<vmem>>, vector<2x5xf32>,
    return
  }
}

</mosaic_0001>

<bundles_post_ra>
// kernel: forward.1
= control target key start
LH: loop header
LB: loop body
LE: loop exit
PB: predicated region body
PF: predicated region fallthrough
CT: control target
= control target key end

     0   :  { %s5622_s0 = inlined_call_operand.vmem [shape: f32[2,4], index: 0, kind: input, shape index: {}]   ;;  %s5623_s1 = inlined_call_operand.vmem [shape: f32[200,8], index: 1, kind: input, shape index: {}]   ;;  %s5624_s2 = inlined_call_operand.vmem [shape: f32[4,32], index: 2, kind: input, shape index: {}]   ;;  %s5625_s3 = inlined_call_operand.vmem [shape: f32[1,32], index: 3, kind: input, shape index: {}]   ;;  %s5626_s4 = inlined_call_operand.vmem [shape: f32[32,64], index: 4, kind: input, shape index: {}]   ;;  %s5627_s5 = inlined_call_operand.vmem [shape: f32[1,64], index: 5, kind: input, shape index: {}]   ;;  %s5628_s6 = inlined_call_operand.vmem [shape: f32[8,32], index: 6, kind: input, shape index: {}]   ;;  %s5629_s7 = inlined_call_operand.vmem [shape: f32[1,32], index: 7, kind: input, shape index: {}]   ;;  %s5630_s8 = inlined_call_operand.vmem [shape: f32[8,32,64], index: 8, kind: input, shape index: {}]   ;;  %s5631_s9 = inlined_call_operand.vmem [shape: f32[1,64], index: 9, kind: input, shape index: {}]   ;;  %s5632_s10 = inlined_call_operand.vmem [shape: f32[64,128], index: 10, kind: input, shape index: {}]   ;;  %s5633_s11 = inlined_call_operand.vmem [shape: f32[64,128], index: 11, kind: input, shape index: {}]   ;;  %s5634_s12 = inlined_call_operand.vmem [shape: f32[64,128], index: 12, kind: input, shape index: {}]   ;;  %s5635_s13 = inlined_call_operand.vmem [shape: f32[1,128], index: 13, kind: input, shape index: {}]   ;;  %s5636_s14 = inlined_call_operand.vmem [shape: f32[128,5], index: 14, kind: input, shape index: {}]   ;;  %s5637_s15 = inlined_call_operand.vmem [shape: f32[1,5], index: 15, kind: input, shape index: {}]   ;;  %s5638_s16 = inlined_call_operand.hbm [shape: f32[2,5], index: 16, kind: output, shape index: {}]  }
   0x1   :  { %5639 = sst [smem:[#allocation8_spill]] %s5622_s0 }
   0x2   :  { %v55_v0 = vld [vmem:[%s5624_s2] sm:$0xf]  ;;  %vm67_vm0 = vcmask 1043456   ;;  %vm63_vm1 = vcmask 31744   ;;  %v4751_v1 = vmov 0.0   ;;  %vm4752_vm2 = vmmov 0  }
   0x3   :  { %3868 = vmatprep.subr.mxu0 %v4751_v1  ;;  %3870 = vmatprep.mubr.msk.f32.mxu0 %vm4752_vm2, %v4751_v1  ;;  %s5640_s25 = sld [smem:[#allocation8_spill]]  ;;  %v142_v3 = vld [vmem:[%s5626_s4] sm:$0xff]  ;;  %v143_v4 = vld [vmem:[%s5626_s4 + $0x8] sm:$0xff]  ;;  %v4753_v6 = vmov 0.0|0.0  }
   0x4   :  { %3869 = vmatpush3.msk.msra.mxu0 %vm67_vm0, %v55_v0  ;;  %v4406_v5 = vpack.c.bf16 %v143_v4, %v142_v3  ;;  %4411 = vmatprep.subr.bf16.mxu1 %v4753_v6 }
   0x9   :  { %v54_v2 = vld [vmem:[%s5640_s25] sm:$0x3] }
   0xa   :  { %21 = vsyncpa [#allocation6], 0  ;;  %3871 = vmatmul.mubr.msk.f32.vlgmr.msra.gmra.mrb[0].mxu0 %vm63_vm1, %v54_v2  ;;  %4405 = vmatprep.subr.bf16.mxu0 %v4753_v6  ;;  %v144_v7 = vld [vmem:[%s5626_s4 + $0x10] sm:$0xff]  ;;  %v145_v8 = vld [vmem:[%s5626_s4 + $0x18] sm:$0xff]  ;;  %vm153_vm3 = vcmask 261120   ;;  %vm261_vm4 = vcmask 64512  }
   0xb   :  { %4407 = vmatpush3.bf16.msra.mxu0 %v4406_v5  ;;  %3881 = vmatprep.mubr.msk.f32.mxu0 %vm4752_vm2, %v4751_v1  ;;  %v4409_v9 = vpack.c.bf16 %v145_v8, %v144_v7  ;;  %v3534_v10 = vld [vmem:[%s5625_s3] ss:$0 sm:$0xff]  ;;  %v229_v17 = vld [vmem:[%s5623_s1 + $0x8] sm:$0xff]  ;;  %v230_v18 = vld [vmem:[%s5623_s1 + $0x10] sm:$0xff]  ;;  %vm587_vm5 = vcmask 258048   ;;  %vm1343_vm6 = vcmask 519168  }
   0xc   :  { %4408 = vmatprep.subr.bf16.mxu0 %v4753_v6  ;;  %3969 = vmatprep.mubr.msk.f32.mxu1 %vm4752_vm2, %v4751_v1  ;;  %v253_v15 = vld [vmem:[%s5628_s6] sm:$0xff]  ;;  %v231_v19 = vld [vmem:[%s5623_s1 + $0x18] sm:$0xff]  ;;  %v233_v21 = vld [vmem:[%s5623_s1 + $0x28] sm:$0xff]  ;;  %vm3187_vm7 = vcmask 523264   ;;  %vm3518_vm8 = vcmask 33792  }
   0xd   :  { %v228_v16 = vld [vmem:[%s5623_s1] sm:$0xff]  ;;  %v234_v22 = vld [vmem:[%s5623_s1 + $0x30] sm:$0xff]  ;;  %v235_v23 = vld [vmem:[%s5623_s1 + $0x38] sm:$0xff] }
   0xe   :  { %v232_v20 = vld [vmem:[%s5623_s1 + $0x20] sm:$0xff]  ;;  %v237_v25 = vld [vmem:[%s5623_s1 + $0x48] sm:$0xff]  ;;  %v238_v26 = vld [vmem:[%s5623_s1 + $0x50] sm:$0xff] }
   0xf   :  { %4410 = vmatpush3.bf16.msra.mxu0 %v4409_v9  ;;  %v236_v24 = vld [vmem:[%s5623_s1 + $0x40] sm:$0xff]  ;;  %v239_v27 = vld [vmem:[%s5623_s1 + $0x58] sm:$0xff]  ;;  %v241_v29 = vld [vmem:[%s5623_s1 + $0x68] sm:$0xff] }
  0x10   :  { %3884 = vmatprep.subr.mxu0 %v4751_v1  ;;  %v240_v28 = vld [vmem:[%s5623_s1 + $0x60] sm:$0xff]  ;;  %v242_v30 = vld [vmem:[%s5623_s1 + $0x70] sm:$0xff]  ;;  %v243_v31 = vld [vmem:[%s5623_s1 + $0x78] sm:$0xff] }
  0x11   :  { %v244_v32 = vld [vmem:[%s5623_s1 + $0x80] sm:$0xff]  ;;  %v245_v33 = vld [vmem:[%s5623_s1 + $0x88] sm:$0xff]  ;;  %v246_v34 = vld [vmem:[%s5623_s1 + $0x90] sm:$0xff] }
  0x12   :  { %v247_v35 = vld [vmem:[%s5623_s1 + $0x98] sm:$0xff]  ;;  %v248_v36 = vld [vmem:[%s5623_s1 + $0xa0] sm:$0xff]  ;;  %v249_v37 = vld [vmem:[%s5623_s1 + $0xa8] sm:$0xff] }
  0x13   :  { %v250_v38 = vld [vmem:[%s5623_s1 + $0xb0] sm:$0xff]  ;;  %v251_v39 = vld [vmem:[%s5623_s1 + $0xb8] sm:$0xff]  ;;  %v252_v40 = vld [vmem:[%s5623_s1 + $0xc0] sm:$0xff] }
  0x14   :  { %v697_v41 = vld [vmem:[%s5630_s8] sm:$0xff]  ;;  %v698_v42 = vld [vmem:[%s5630_s8 + $0x8] sm:$0xff]  ;;  %v699_v44 = vld [vmem:[%s5630_s8 + $0x10] sm:$0xff] }
  0x15   :  { %v5035_v43 = vpack.c.bf16 %v698_v42, %v697_v41  ;;  %v700_v45 = vld [vmem:[%s5630_s8 + $0x18] sm:$0xff]  ;;  %v5058_v49 = vld [vmem:[%s5629_s7] ss:$0 sm:$0xff] }
  0x16   :  { %v5047_v46 = vpack.c.bf16 %v700_v45, %v699_v44 }
  0x17   :  { %4413 = vmatpush3.bf16.msra.mxu1 %v5035_v43 }
  0x18   :  { %4414 = vmatprep.subr.bf16.mxu1 %v4753_v6 }
  0x1b   :  { %4416 = vmatpush3.bf16.msra.mxu1 %v5047_v46 }
  0x1c   :  { %4417 = vmatprep.subr.bf16.mxu1 %v4753_v6 }
  0xdd   :  { %v137_v11 = vpop.f32.mrb[0].mxu0 }
  0xde   :  { %v138_v12 = vadd.f32 %v3534_v10, %v137_v11  ;;  %v3872_v13 = vpop.f32.mrb[1].mxu0 }
  0xe0   :  { %v141_v14 = vmax.f32 %v138_v12, 0.0 }
  0xe2   :  { %3882 = vmatmul.mubr.msk.f32.vlgmr.msra.gmra.mrb[2].mxu0 %vm153_vm3, %v141_v14 }
  0xe3   :  { %3885 = vmatpush3.msra.mxu0 %v253_v15  ;;  %3886 = vmatprep.mubr.msk.f32.mxu0 %vm4752_vm2, %v4751_v1 }
  0xe4   :  { %4507 = vmatprep.subr.bf16.mxu0 %v4753_v6 }
  0xe6   :  { %3887 = vmatmul.mubr.msk.f32.vlgmr.msra.gmra.mrb[4].mxu0 %vm261_vm4, %v228_v16 }
  0xe7   :  { %3889 = vmatprep.mubr.msk.f32.mxu0 %vm4752_vm2, %v4751_v1  ;;  %4509 = vmatpush3.bf16.msra.mxu0 %v5035_v43 }
  0xe8   :  { %4510 = vmatprep.subr.bf16.mxu0 %v4753_v6 }
  0xea   :  { %3890 = vmatmul.mubr.msk.f32.gmra.mrb[6].mxu0 %vm261_vm4, %v229_v17 }
  0xeb   :  { %3892 = vmatprep.mubr.msk.f32.mxu0 %vm4752_vm2, %v4751_v1  ;;  %4512 = vmatpush3.bf16.msra.mxu0 %v5047_v46 }
  0xec   :  { %4513 = vmatprep.subr.bf16.mxu0 %v4753_v6 }
  0xee   :  { %3893 = vmatmul.mubr.msk.f32.gmra.mrb[8].mxu0 %vm261_vm4, %v230_v18 }
  0xef   :  { %3895 = vmatprep.mubr.msk.f32.mxu0 %vm4752_vm2, %v4751_v1 }
  0xf2   :  { %3896 = vmatmul.mubr.msk.f32.gmra.mrb[10].mxu0 %vm261_vm4, %v231_v19 }
  0xf3   :  { %3898 = vmatprep.mubr.msk.f32.mxu0 %vm4752_vm2, %v4751_v1 }
  0xf6   :  { %3899 = vmatmul.mubr.msk.f32.gmra.mrb[12].mxu0 %vm261_vm4, %v232_v20 }
  0xf7   :  { %3901 = vmatprep.mubr.msk.f32.mxu0 %vm4752_vm2, %v4751_v1 }
  0xfa   :  { %3902 = vmatmul.mubr.msk.f32.gmra.mrb[14].mxu0 %vm261_vm4, %v233_v21 }
  0xfb   :  { %3904 = vmatprep.mubr.msk.f32.mxu0 %vm4752_vm2, %v4751_v1 }
  0xfe   :  { %3905 = vmatmul.mubr.msk.f32.gmra.mrb[16].mxu0 %vm261_vm4, %v234_v22 }
  0xff   :  { %3907 = vmatprep.mubr.msk.f32.mxu0 %vm4752_vm2, %v4751_v1 }
 0x102   :  { %3908 = vmatmul.mubr.msk.f32.gmra.mrb[18].mxu0 %vm261_vm4, %v235_v23  ;;  %v3565_v23 = vld [vmem:[%s5630_s8 + $0x20] sm:$0xff] }
 0x103   :  { %3910 = vmatprep.mubr.msk.f32.mxu0 %vm4752_vm2, %v4751_v1 }
 0x106   :  { %3911 = vmatmul.mubr.msk.f32.gmra.mrb[20].mxu0 %vm261_vm4, %v236_v24  ;;  %v3566_v24 = vld [vmem:[%s5630_s8 + $0x28] sm:$0xff] }
 0x107   :  { %3913 = vmatprep.mubr.msk.f32.mxu0 %vm4752_vm2, %v4751_v1 }
 0x10a   :  { %3914 = vmatmul.mubr.msk.f32.gmra.mrb[22].mxu0 %vm261_vm4, %v237_v25 }
 0x10b   :  { %3916 = vmatprep.mubr.msk.f32.mxu0 %vm4752_vm2, %v4751_v1 }
 0x10e   :  { %3917 = vmatmul.mubr.msk.f32.gmra.mrb[24].mxu0 %vm261_vm4, %v238_v26 }
 0x10f   :  { %3919 = vmatprep.mubr.msk.f32.mxu0 %vm4752_vm2, %v4751_v1 }
 0x112   :  { %3920 = vmatmul.mubr.msk.f32.gmra.mrb[26].mxu0 %vm261_vm4, %v239_v27 }
 0x113   :  { %3922 = vmatprep.mubr.msk.f32.mxu0 %vm4752_vm2, %v4751_v1 }
 0x116   :  { %3923 = vmatmul.mubr.msk.f32.gmra.mrb[28].mxu0 %vm261_vm4, %v240_v28 }
 0x117   :  { %3925 = vmatprep.mubr.msk.f32.mxu0 %vm4752_vm2, %v4751_v1 }
 0x11a   :  { %3926 = vmatmul.mubr.msk.f32.gmra.mrb[30].mxu0 %vm261_vm4, %v241_v29 }
 0x11b   :  { %3928 = vmatprep.mubr.msk.f32.mxu0 %vm4752_vm2, %v4751_v1 }
 0x11e   :  { %3929 = vmatmul.mubr.msk.f32.gmra.mrb[32].mxu0 %vm261_vm4, %v242_v30 }
 0x11f   :  { %3931 = vmatprep.mubr.msk.f32.mxu0 %vm4752_vm2, %v4751_v1 }
 0x122   :  { %3932 = vmatmul.mubr.msk.f32.gmra.mrb[34].mxu0 %vm261_vm4, %v243_v31 }
 0x123   :  { %3934 = vmatprep.mubr.msk.f32.mxu0 %vm4752_vm2, %v4751_v1 }
 0x126   :  { %3935 = vmatmul.mubr.msk.f32.gmra.mrb[36].mxu0 %vm261_vm4, %v244_v32  ;;  %v5082_v32 = vpack.c.bf16 %v3566_v24, %v3565_v23 }
 0x127   :  { %3937 = vmatprep.mubr.msk.f32.mxu0 %vm4752_vm2, %v4751_v1 }
 0x12a   :  { %3938 = vmatmul.mubr.msk.f32.gmra.mrb[38].mxu0 %vm261_vm4, %v245_v33 }
 0x12b   :  { %3940 = vmatprep.mubr.msk.f32.mxu0 %vm4752_vm2, %v4751_v1 }
 0x12e   :  { %3941 = vmatmul.mubr.msk.f32.gmra.mrb[40].mxu0 %vm261_vm4, %v246_v34 }
 0x12f   :  { %3943 = vmatprep.mubr.msk.f32.mxu0 %vm4752_vm2, %v4751_v1 }
 0x132   :  { %3944 = vmatmul.mubr.msk.f32.gmra.mrb[42].mxu0 %vm261_vm4, %v247_v35 }
 0x133   :  { %3946 = vmatprep.mubr.msk.f32.mxu0 %vm4752_vm2, %v4751_v1 }
 0x136   :  { %3947 = vmatmul.mubr.msk.f32.gmra.mrb[44].mxu0 %vm261_vm4, %v248_v36  ;;  %v3567_v36 = vld [vmem:[%s5630_s8 + $0x30] sm:$0xff] }
 0x137   :  { %3949 = vmatprep.mubr.msk.f32.mxu0 %vm4752_vm2, %v4751_v1 }
 0x13a   :  { %3950 = vmatmul.mubr.msk.f32.gmra.mrb[46].mxu0 %vm261_vm4, %v249_v37  ;;  %v3568_v37 = vld [vmem:[%s5630_s8 + $0x38] sm:$0xff] }
 0x13b   :  { %3952 = vmatprep.mubr.msk.f32.mxu0 %vm4752_vm2, %v4751_v1  ;;  %v5094_v44 = vpack.c.bf16 %v3568_v37, %v3567_v36 }
 0x13e   :  { %3953 = vmatmul.mubr.msk.f32.gmra.mrb[48].mxu0 %vm261_vm4, %v250_v38 }
 0x13f   :  { %3955 = vmatprep.mubr.msk.f32.mxu0 %vm4752_vm2, %v4751_v1 }
 0x142   :  { %3956 = vmatmul.mubr.msk.f32.gmra.mrb[50].mxu0 %vm261_vm4, %v251_v39 }
 0x143   :  { %3958 = vmatprep.mubr.msk.f32.mxu0 %vm4752_vm2, %v4751_v1 }
 0x146   :  { %3959 = vmatmul.mubr.msk.f32.gmra.mrb[52].mxu0 %vm261_vm4, %v252_v40 }
 0x147   :  { %4145 = vmatprep.mubr.msk.f32.mxu0 %vm4752_vm2, %v4751_v1 }
 0x1b5   :  { %v5053_v47 = vpop.f32.mrb[2].mxu0 }
 0x1b6   :  { %v3883_v48 = vpop.f32.mrb[3].mxu0 }
 0x1b7   :  { %v3569_v48 = vld [vmem:[%s5630_s8 + $0x40] sm:$0xff] }
 0x1b9   :  { %v403_v50 = vpop.f32.mrb[4].mxu0 }
 0x1ba   :  { %v404_v51 = vadd.f32 %v5058_v49, %v403_v50  ;;  %v3888_v52 = vpop.f32.mrb[5].mxu0  ;;  %v3570_v50 = vld [vmem:[%s5630_s8 + $0x48] sm:$0xff] }
 0x1bc   :  { %v527_v53 = vmax.f32 %v404_v51, 0.0 }
 0x1bd   :  { %v408_v54 = vpop.f32.mrb[6].mxu0 }
 0x1be   :  { %552 = vst.msk [vmem:[#allocation2] sm:$0xff] %vm153_vm3, %v527_v53  ;;  %v409_v55 = vadd.f32 %v5058_v49, %v408_v54  ;;  %v3891_v56 = vpop.f32.mrb[7].mxu0 }
 0x1c0   :  { %v528_v57 = vmax.f32 %v409_v55, 0.0  ;;  %v5109_v55 = vpack.c.bf16 %v3570_v50, %v3569_v48 }
 0x1c1   :  { %v413_v58 = vpop.f32.mrb[8].mxu0 }
 0x1c2   :  { %553 = vst.msk [vmem:[#allocation2 + $0x8] sm:$0xff] %vm153_vm3, %v528_v57  ;;  %v414_v59 = vadd.f32 %v5058_v49, %v413_v58  ;;  %v3894_v60 = vpop.f32.mrb[9].mxu0 }
 0x1c3   :  { %v3571_v60 = vld [vmem:[%s5630_s8 + $0x50] sm:$0xff] }
 0x1c4   :  { %v529_v61 = vmax.f32 %v414_v59, 0.0 }
 0x1c5   :  { %v418_v62 = vpop.f32.mrb[10].mxu0 }
 0x1c6   :  { %554 = vst.msk [vmem:[#allocation2 + $0x10] sm:$0xff] %vm153_vm3, %v529_v61  ;;  %v419_v63 = vadd.f32 %v5058_v49, %v418_v62  ;;  %v3897_v0 = vpop.f32.mrb[11].mxu0  ;;  %v3572_v61 = vld [vmem:[%s5630_s8 + $0x58] sm:$0xff] }
 0x1c8   :  { %v530_v2 = vmax.f32 %v419_v63, 0.0 }
 0x1c9   :  { %v577_v3 = vld [vmem:[#allocation2] ss:$2 sm:$0x1f]  ;;  %v423_v4 = vpop.f32.mrb[12].mxu0 }
 0x1ca   :  { %555 = vst.msk [vmem:[#allocation2 + $0x18] sm:$0xff] %vm153_vm3, %v530_v2  ;;  %v579_v5 = vld [vmem:[#allocation2 + $0x1] ss:$2 sm:$0x1f]  ;;  %v424_v7 = vadd.f32 %v5058_v49, %v423_v4  ;;  %v3900_v8 = vpop.f32.mrb[13].mxu0 }
 0x1cb   :  { %v584_v11 = vmax.f32 %v577_v3, %v579_v5  ;;  %v5121_v3 = vpack.c.bf16 %v3572_v61, %v3571_v60  ;;  %v3573_v8 = vld [vmem:[%s5630_s8 + $0x60] sm:$0xff] }
 0x1cc   :  { %v531_v13 = vmax.f32 %v424_v7, 0.0 }
 0x1cd   :  { %v581_v9 = vld [vmem:[#allocation2 + $0xa] ss:$2 sm:$0x1f]  ;;  %v583_v10 = vld [vmem:[#allocation2 + $0xb] ss:$2 sm:$0x1f] }
 0x1ce   :  { %v585_v12 = vmax.f32 %v581_v9, %v583_v10  ;;  %v428_v14 = vpop.f32.mrb[14].mxu0  ;;  %556 = vst.msk [vmem:[#allocation2 + $0x20] sm:$0xff] %vm153_vm3, %v531_v13  ;;  %v3574_v9 = vld [vmem:[%s5630_s8 + $0x68] sm:$0xff] }
 0x1cf   :  { %v429_v15 = vadd.f32 %v5058_v49, %v428_v14  ;;  %v3903_v16 = vpop.f32.mrb[15].mxu0  ;;  %v5135_v14 = vpack.c.bf16 %v3574_v9, %v3573_v8 }
 0x1d0   :  { %v586_v17 = vmax.f32 %v584_v11, %v585_v12 }
 0x1d1   :  { %v532_v18 = vmax.f32 %v429_v15, 0.0  ;;  %v433_v19 = vpop.f32.mrb[16].mxu0  ;;  %v590_v22 = vld [vmem:[#allocation2 + $0x14] ss:$2 sm:$0x1f] }
 0x1d2   :  { %588 = vst.msk [vmem:[#allocation3] sm:$0x1f] %vm587_vm5, %v586_v17  ;;  %v434_v20 = vadd.f32 %v5058_v49, %v433_v19  ;;  %v3906_v21 = vpop.f32.mrb[17].mxu0  ;;  %v592_v25 = vld [vmem:[#allocation2 + $0x15] ss:$2 sm:$0x1f] }
 0x1d3   :  { %557 = vst.msk [vmem:[#allocation2 + $0x28] sm:$0xff] %vm153_vm3, %v532_v18  ;;  %v597_v33 = vmax.f32 %v590_v22, %v592_v25  ;;  %v3575_v19 = vld [vmem:[%s5630_s8 + $0x70] sm:$0xff] }
 0x1d4   :  { %v533_v26 = vmax.f32 %v434_v20, 0.0  ;;  %v3576_v20 = vld [vmem:[%s5630_s8 + $0x78] sm:$0xff] }
 0x1d5   :  { %v438_v27 = vpop.f32.mrb[18].mxu0  ;;  %v594_v30 = vld [vmem:[#allocation2 + $0x1e] ss:$2 sm:$0x1f] }
 0x1d6   :  { %v439_v28 = vadd.f32 %v5058_v49, %v438_v27  ;;  %v3909_v29 = vpop.f32.mrb[19].mxu0  ;;  %v596_v31 = vld [vmem:[#allocation2 + $0x1f] ss:$2 sm:$0x1f]  ;;  %558 = vst.msk [vmem:[#allocation2 + $0x30] sm:$0xff] %vm153_vm3, %v533_v26 }
 0x1d7   :  { %v598_v34 = vmax.f32 %v594_v30, %v596_v31  ;;  %v3577_v30 = vld [vmem:[%s5630_s8 + $0x80] sm:$0xff]  ;;  %v3578_v31 = vld [vmem:[%s5630_s8 + $0x88] sm:$0xff] }
 0x1d8   :  { %v534_v35 = vmax.f32 %v439_v28, 0.0  ;;  %v5149_v28 = vpack.c.bf16 %v3576_v20, %v3575_v19  ;;  %v5165_v37 = vpack.c.bf16 %v3578_v31, %v3577_v30  ;;  %v3588_v30 = vld [vmem:[%s5630_s8 + $0xd8] sm:$0xff] }
 0x1d9   :  { %v737_v38 = vld [vmem:[#allocation3] sm:$0xf]  ;;  %v443_v39 = vpop.f32.mrb[20].mxu0  ;;  %v599_v40 = vmax.f32 %v597_v33, %v598_v34 }
 0x1da   :  { %559 = vst.msk [vmem:[#allocation2 + $0x38] sm:$0xff] %vm153_vm3, %v534_v35  ;;  %3970 = vmatmul.mubr.msk.f32.vlgmr.msra.gmra.mrb[0].mxu1 %vm153_vm3, %v737_v38  ;;  %v444_v41 = vadd.f32 %v5058_v49, %v443_v39  ;;  %v3912_v42 = vpop.f32.mrb[21].mxu0  ;;  %v818_v59 = vld [vmem:[#allocation3 + $0x1] sm:$0xf]  ;;  %v3579_v39 = vld [vmem:[%s5630_s8 + $0x90] sm:$0xff] }
 0x1db   :  { %4419 = vmatpush3.bf16.msra.mxu1 %v5082_v32  ;;  %3980 = vmatprep.mubr.msk.f32.mxu1 %vm4752_vm2, %v4751_v1  ;;  %600 = vst.msk [vmem:[#allocation3 + $0x5] sm:$0x1f] %vm587_vm5, %v599_v40  ;;  %v3580_v40 = vld [vmem:[%s5630_s8 + $0x98] sm:$0xff] }
 0x1dc   :  { %4420 = vmatprep.subr.bf16.mxu1 %v4753_v6  ;;  %v535_v45 = vmax.f32 %v444_v41, 0.0 }
 0x1dd   :  { %v448_v51 = vpop.f32.mrb[22].mxu0  ;;  %v602_v52 = vld [vmem:[#allocation2 + $0x28] ss:$2 sm:$0x1f] }
 0x1de   :  { %v604_v53 = vld [vmem:[#allocation2 + $0x29] ss:$2 sm:$0x1f]  ;;  %560 = vst.msk [vmem:[#allocation2 + $0x40] sm:$0xff] %vm153_vm3, %v535_v45  ;;  %v449_v54 = vadd.f32 %v5058_v49, %v448_v51  ;;  %v3915_v56 = vpop.f32.mrb[23].mxu0 }
 0x1df   :  { %4422 = vmatpush3.bf16.msra.mxu1 %v5094_v44  ;;  %v609_v57 = vmax.f32 %v602_v52, %v604_v53  ;;  %v5178_v52 = vpack.c.bf16 %v3580_v40, %v3579_v39  ;;  %v3582_v56 = vld [vmem:[%s5630_s8 + $0xa8] sm:$0xff]  ;;  %v3589_v39 = vld [vmem:[%s5630_s8 + $0xe0] sm:$0xff] }
 0x1e0   :  { %v536_v58 = vmax.f32 %v449_v54, 0.0  ;;  %4423 = vmatprep.subr.bf16.mxu1 %v4753_v6  ;;  %v3581_v54 = vld [vmem:[%s5630_s8 + $0xa0] sm:$0xff]  ;;  %v3590_v40 = vld [vmem:[%s5630_s8 + $0xe8] sm:$0xff] }
 0x1e1   :  { %v606_v62 = vld [vmem:[#allocation2 + $0x32] ss:$2 sm:$0x1f]  ;;  %v608_v63 = vld [vmem:[#allocation2 + $0x33] ss:$2 sm:$0x1f] }
 0x1e2   :  { %v610_v0 = vmax.f32 %v606_v62, %v608_v63  ;;  %561 = vst.msk [vmem:[#allocation2 + $0x48] sm:$0xff] %vm153_vm3, %v536_v58  ;;  %3981 = vmatmul.mubr.msk.f32.vlgmr.msra.gmra.mrb[0].mxu1 %vm153_vm3, %v818_v59  ;;  %v453_v2 = vpop.f32.mrb[24].mxu0  ;;  %v893_v18 = vld [vmem:[#allocation3 + $0x5] sm:$0xf]  ;;  %v5192_v63 = vpack.c.bf16 %v3582_v56, %v3581_v54  ;;  %v3592_v56 = vld [vmem:[%s5630_s8 + $0xf8] sm:$0xff] }
 0x1e3   :  { %4425 = vmatpush3.bf16.msra.mxu1 %v5109_v55  ;;  %v454_v4 = vadd.f32 %v5058_v49, %v453_v2  ;;  %3991 = vmatprep.mubr.msk.f32.mxu1 %vm4752_vm2, %v4751_v1  ;;  %v3918_v5 = vpop.f32.mrb[25].mxu0  ;;  %v968_v42 = vld [vmem:[#allocation3 + $0x6] sm:$0xf] }
 0x1e4   :  { %v611_v7 = vmax.f32 %v609_v57, %v610_v0  ;;  %4426 = vmatprep.subr.bf16.mxu1 %v4753_v6  ;;  %v3583_v5 = vld [vmem:[%s5630_s8 + $0xb0] sm:$0xff] }
 0x1e5   :  { %v614_v10 = vld [vmem:[#allocation2 + $0x3c] ss:$2 sm:$0x1f]  ;;  %v616_v11 = vld [vmem:[#allocation2 + $0x3d] ss:$2 sm:$0x1f] }
 0x1e6   :  { %612 = vst.msk [vmem:[#allocation3 + $0xa] sm:$0x1f] %vm587_vm5, %v611_v7  ;;  %v537_v12 = vmax.f32 %v454_v4, 0.0  ;;  %v458_v13 = vpop.f32.mrb[26].mxu0  ;;  %v621_v17 = vmax.f32 %v614_v10, %v616_v11  ;;  %v3584_v7 = vld [vmem:[%s5630_s8 + $0xb8] sm:$0xff]  ;;  %v3591_v54 = vld [vmem:[%s5630_s8 + $0xf0] sm:$0xff] }
 0x1e7   :  { %4428 = vmatpush3.bf16.msra.mxu1 %v5121_v3  ;;  %v459_v15 = vadd.f32 %v5058_v49, %v458_v13  ;;  %v3921_v16 = vpop.f32.mrb[27].mxu0 }
 0x1e8   :  { %562 = vst.msk [vmem:[#allocation2 + $0x50] sm:$0xff] %vm153_vm3, %v537_v12  ;;  %4429 = vmatprep.subr.bf16.mxu1 %v4753_v6  ;;  %v5205_v12 = vpack.c.bf16 %v3584_v7, %v3583_v5  ;;  %v5263_v5 = vpack.c.bf16 %v3592_v56, %v3591_v54 }
 0x1e9   :  { %v618_v21 = vld [vmem:[#allocation2 + $0x46] ss:$2 sm:$0x1f]  ;;  %v620_v22 = vld [vmem:[#allocation2 + $0x47] ss:$2 sm:$0x1f] }
 0x1ea   :  { %v622_v23 = vmax.f32 %v618_v21, %v620_v22  ;;  %3992 = vmatmul.mubr.msk.f32.vlgmr.msra.gmra.mrb[0].mxu1 %vm153_vm3, %v893_v18  ;;  %v538_v24 = vmax.f32 %v459_v15, 0.0  ;;  %v463_v25 = vpop.f32.mrb[28].mxu0  ;;  %v3586_v18 = vld [vmem:[%s5630_s8 + $0xc8] sm:$0xff] }
 0x1eb   :  { %4431 = vmatpush3.bf16.msra.mxu1 %v5135_v14  ;;  %v464_v26 = vadd.f32 %v5058_v49, %v463_v25  ;;  %v3924_v27 = vpop.f32.mrb[29].mxu0  ;;  %4002 = vmatprep.mubr.msk.f32.mxu1 %vm4752_vm2, %v4751_v1 }
 0x1ec   :  { %v623_v29 = vmax.f32 %v621_v17, %v622_v23  ;;  %563 = vst.msk [vmem:[#allocation2 + $0x58] sm:$0xff] %vm153_vm3, %v538_v24  ;;  %4432 = vmatprep.subr.bf16.mxu1 %v4753_v6  ;;  %v3585_v17 = vld [vmem:[%s5630_s8 + $0xc0] sm:$0xff] }
 0x1ed   :  { %v539_v33 = vmax.f32 %v464_v26, 0.0  ;;  %v468_v34 = vpop.f32.mrb[30].mxu0  ;;  %v1043_v2 = vld [vmem:[#allocation3 + $0xa] sm:$0xf]  ;;  %v5219_v25 = vpack.c.bf16 %v3586_v18, %v3585_v17 }
 0x1ee   :  { %624 = vst.msk [vmem:[#allocation3 + $0xf] sm:$0x1f] %vm587_vm5, %v623_v29  ;;  %v469_v35 = vadd.f32 %v5058_v49, %v468_v34  ;;  %v3927_v36 = vpop.f32.mrb[31].mxu0  ;;  %v3587_v29 = vld [vmem:[%s5630_s8 + $0xd0] sm:$0xff] }
 0x1ef   :  { %564 = vst.msk [vmem:[#allocation2 + $0x60] sm:$0xff] %vm153_vm3, %v539_v33  ;;  %4434 = vmatpush3.bf16.msra.mxu1 %v5149_v28  ;;  %v1118_v33 = vld [vmem:[#allocation3 + $0xb] sm:$0xf] }
 0x1f0   :  { %v540_v38 = vmax.f32 %v469_v35, 0.0  ;;  %4435 = vmatprep.subr.bf16.mxu1 %v4753_v6 }
 0x1f1   :  { %v473_v41 = vpop.f32.mrb[32].mxu0 }
 0x1f2   :  { %565 = vst.msk [vmem:[#allocation2 + $0x68] sm:$0xff] %vm153_vm3, %v540_v38  ;;  %v474_v45 = vadd.f32 %v5058_v49, %v473_v41  ;;  %4003 = vmatmul.mubr.msk.f32.vlgmr.msra.gmra.mrb[0].mxu1 %vm153_vm3, %v968_v42  ;;  %v3930_v48 = vpop.f32.mrb[33].mxu0  ;;  %v5234_v38 = vpack.c.bf16 %v3588_v30, %v3587_v29 }
 0x1f3   :  { %v626_v50 = vld [vmem:[#allocation2 + $0x50] ss:$2 sm:$0x1f]  ;;  %v628_v51 = vld [vmem:[#allocation2 + $0x51] ss:$2 sm:$0x1f]  ;;  %4437 = vmatpush3.bf16.msra.mxu1 %v5165_v37  ;;  %4013 = vmatprep.mubr.msk.f32.mxu1 %vm4752_vm2, %v4751_v1 }
 0x1f4   :  { %v541_v53 = vmax.f32 %v474_v45, 0.0  ;;  %4438 = vmatprep.subr.bf16.mxu1 %v4753_v6  ;;  %v633_v57 = vmax.f32 %v626_v50, %v628_v51 }
 0x1f5   :  { %v478_v58 = vpop.f32.mrb[34].mxu0 }
 0x1f6   :  { %v630_v59 = vld [vmem:[#allocation2 + $0x5a] ss:$2 sm:$0x1f]  ;;  %v632_v60 = vld [vmem:[#allocation2 + $0x5b] ss:$2 sm:$0x1f]  ;;  %v479_v61 = vadd.f32 %v5058_v49, %v478_v58 }
 0x1f7   :  { %566 = vst.msk [vmem:[#allocation2 + $0x70] sm:$0xff] %vm153_vm3, %v541_v53  ;;  %v634_v62 = vmax.f32 %v630_v59, %v632_v60  ;;  %4440 = vmatpush3.bf16.msra.mxu1 %v5178_v52  ;;  %v3933_v0 = vpop.f32.mrb[35].mxu0  ;;  %v5248_v53 = vpack.c.bf16 %v3590_v40, %v3589_v39  ;;  %v1193_v59 = vld [vmem:[#allocation3 + $0xf] sm:$0xf]  ;;  %v1345_v39 = vld [vmem:[#allocation3 + $0x5] sm:$0xf] }
 0x1f8   :  { %4441 = vmatprep.subr.bf16.mxu1 %v4753_v6  ;;  %v542_v4 = vmax.f32 %v479_v61, 0.0 }
 0x1f9   :  { %v635_v8 = vmax.f32 %v633_v57, %v634_v62  ;;  %v638_v9 = vld [vmem:[#allocation2 + $0x64] ss:$2 sm:$0x1f]  ;;  %v640_v10 = vld [vmem:[#allocation2 + $0x65] ss:$2 sm:$0x1f] }
 0x1fa   :  { %4014 = vmatmul.mubr.msk.f32.vlgmr.msra.gmra.mrb[0].mxu1 %vm153_vm3, %v1043_v2  ;;  %567 = vst.msk [vmem:[#allocation2 + $0x78] sm:$0xff] %vm153_vm3, %v542_v4  ;;  %v483_v11 = vpop.f32.mrb[36].mxu0  ;;  %v645_v16 = vmax.f32 %v638_v9, %v640_v10 }
 0x1fb   :  { %636 = vst.msk [vmem:[#allocation3 + $0x14] sm:$0x1f] %vm587_vm5, %v635_v8  ;;  %4443 = vmatpush3.bf16.msra.mxu1 %v5192_v63  ;;  %v484_v13 = vadd.f32 %v5058_v49, %v483_v11  ;;  %v3936_v15 = vpop.f32.mrb[37].mxu0  ;;  %4024 = vmatprep.mubr.msk.f32.mxu1 %vm4752_vm2, %v4751_v1 }
 0x1fc   :  { %4444 = vmatprep.subr.bf16.mxu1 %v4753_v6 }
 0x1fd   :  { %v543_v22 = vmax.f32 %v484_v13, 0.0  ;;  %v488_v23 = vpop.f32.mrb[38].mxu0 }
 0x1fe   :  { %v642_v19 = vld [vmem:[#allocation2 + $0x6e] ss:$2 sm:$0x1f]  ;;  %v644_v20 = vld [vmem:[#allocation2 + $0x6f] ss:$2 sm:$0x1f]  ;;  %v489_v24 = vadd.f32 %v5058_v49, %v488_v23 }
 0x1ff   :  { %v646_v21 = vmax.f32 %v642_v19, %v644_v20  ;;  %4446 = vmatpush3.bf16.msra.mxu1 %v5205_v12  ;;  %v3939_v26 = vpop.f32.mrb[39].mxu0  ;;  %568 = vst.msk [vmem:[#allocation2 + $0x80] sm:$0xff] %vm153_vm3, %v543_v22  ;;  %v1268_v19 = vld [vmem:[#allocation3 + $0x10] sm:$0xf] }
 0x200   :  { %4447 = vmatprep.subr.bf16.mxu1 %v4753_v6  ;;  %v544_v31 = vmax.f32 %v489_v24, 0.0 }
 0x201   :  { %v647_v27 = vmax.f32 %v645_v16, %v646_v21  ;;  %v493_v34 = vpop.f32.mrb[40].mxu0 }
 0x202   :  { %4025 = vmatmul.mubr.msk.f32.vlgmr.msra.gmra.mrb[0].mxu1 %vm153_vm3, %v1118_v33  ;;  %v494_v35 = vadd.f32 %v5058_v49, %v493_v34  ;;  %v3942_v36 = vpop.f32.mrb[41].mxu0  ;;  %569 = vst.msk [vmem:[#allocation2 + $0x88] sm:$0xff] %vm153_vm3, %v544_v31 }
 0x203   :  { %648 = vst.msk [vmem:[#allocation3 + $0x19] sm:$0x1f] %vm587_vm5, %v647_v27  ;;  %4449 = vmatpush3.bf16.msra.mxu1 %v5219_v25  ;;  %4035 = vmatprep.mubr.msk.f32.mxu1 %vm4752_vm2, %v4751_v1 }
 0x204   :  { %4450 = vmatprep.subr.bf16.mxu1 %v4753_v6  ;;  %v545_v41 = vmax.f32 %v494_v35, 0.0 }
 0x205   :  { %v498_v42 = vpop.f32.mrb[42].mxu0 }
 0x206   :  { %570 = vst.msk [vmem:[#allocation2 + $0x90] sm:$0xff] %vm153_vm3, %v545_v41  ;;  %v499_v45 = vadd.f32 %v5058_v49, %v498_v42  ;;  %v3945_v48 = vpop.f32.mrb[43].mxu0  ;;  %v650_v50 = vld [vmem:[#allocation2 + $0x78] ss:$2 sm:$0x1f] }
 0x207   :  { %v652_v51 = vld [vmem:[#allocation2 + $0x79] ss:$2 sm:$0x1f]  ;;  %4452 = vmatpush3.bf16.msra.mxu1 %v5234_v38 }
 0x208   :  { %4453 = vmatprep.subr.bf16.mxu1 %v4753_v6  ;;  %v546_v57 = vmax.f32 %v499_v45, 0.0  ;;  %v657_v58 = vmax.f32 %v650_v50, %v652_v51 }
 0x209   :  { %v503_v61 = vpop.f32.mrb[44].mxu0  ;;  %v654_v62 = vld [vmem:[#allocation2 + $0x82] ss:$2 sm:$0x1f] }
 0x20a   :  { %v1946_v60 = vld [vmem:[#allocation3 + $0x19] sm:$0xf]  ;;  %4036 = vmatmul.mubr.msk.f32.vlgmr.msra.gmra.mrb[0].mxu1 %vm153_vm3, %v1193_v59  ;;  %571 = vst.msk [vmem:[#allocation2 + $0x98] sm:$0xff] %vm153_vm3, %v546_v57  ;;  %v504_v2 = vadd.f32 %v5058_v49, %v503_v61  ;;  %v3948_v7 = vpop.f32.mrb[45].mxu0 }
 0x20b   :  { %v656_v0 = vld [vmem:[#allocation2 + $0x83] ss:$2 sm:$0x1f]  ;;  %4146 = vmatmul.mubr.msk.f32.vlgmr.msra.gmra.mrb[54].mxu0 %vm153_vm3, %v1946_v60  ;;  %4455 = vmatpush3.bf16.msra.mxu1 %v5248_v53 }
 0x20c   :  { %v658_v4 = vmax.f32 %v654_v62, %v656_v0  ;;  %4515 = vmatpush3.bf16.msra.mxu0 %v5082_v32  ;;  %4456 = vmatprep.subr.bf16.mxu1 %v4753_v6  ;;  %v547_v8 = vmax.f32 %v504_v2, 0.0  ;;  %v2021_v15 = vld [vmem:[#allocation3 + $0x1a] sm:$0xf] }
 0x20d   :  { %4516 = vmatprep.subr.bf16.mxu0 %v4753_v6  ;;  %v662_v10 = vld [vmem:[#allocation2 + $0x8c] ss:$2 sm:$0x1f]  ;;  %v664_v11 = vld [vmem:[#allocation2 + $0x8d] ss:$2 sm:$0x1f]  ;;  %4046 = vmatprep.mubr.msk.f32.mxu1 %vm4752_vm2, %v4751_v1 }
 0x20e   :  { %v659_v9 = vmax.f32 %v657_v58, %v658_v4  ;;  %4156 = vmatprep.mubr.msk.f32.mxu0 %vm4752_vm2, %v4751_v1  ;;  %572 = vst.msk [vmem:[#allocation2 + $0xa0] sm:$0xff] %vm153_vm3, %v547_v8  ;;  %v508_v13 = vpop.f32.mrb[46].mxu0  ;;  %v669_v18 = vmax.f32 %v662_v10, %v664_v11  ;;  %v1420_v58 = vld [vmem:[#allocation3 + $0x6] sm:$0xf]  ;;  %v1570_v11 = vld [vmem:[#allocation3 + $0xb] sm:$0xf] }
 0x20f   :  { %4458 = vmatpush3.bf16.msra.mxu1 %v5263_v5  ;;  %v509_v16 = vadd.f32 %v5058_v49, %v508_v13  ;;  %v3951_v17 = vpop.f32.mrb[47].mxu0 }
 0x210   :  { %660 = vst.msk [vmem:[#allocation3 + $0x1e] sm:$0x1f] %vm587_vm5, %v659_v9  ;;  %4518 = vmatpush3.bf16.msra.mxu0 %v5094_v44  ;;  %4459 = vmatprep.subr.bf16.mxu1 %v4753_v6  ;;  %v1495_v9 = vld [vmem:[#allocation3 + $0xa] sm:$0xf]  ;;  %v1720_v17 = vld [vmem:[#allocation3 + $0x10] sm:$0xf] }
 0x211   :  { %4519 = vmatprep.subr.bf16.mxu0 %v4753_v6  ;;  %v666_v20 = vld [vmem:[#allocation2 + $0x96] ss:$2 sm:$0x1f]  ;;  %v668_v21 = vld [vmem:[#allocation2 + $0x97] ss:$2 sm:$0x1f] }
 0x212   :  { %v670_v22 = vmax.f32 %v666_v20, %v668_v21  ;;  %4047 = vmatmul.mubr.msk.f32.vlgmr.msra.gmra.mrb[0].mxu1 %vm153_vm3, %v1268_v19  ;;  %v548_v23 = vmax.f32 %v509_v16, 0.0  ;;  %v513_v24 = vpop.f32.mrb[48].mxu0  ;;  %v1870_v19 = vld [vmem:[#allocation3 + $0x15] sm:$0xf] }
 0x213   :  { %4157 = vmatmul.mubr.msk.f32.vlgmr.msra.gmra.mrb[54].mxu0 %vm153_vm3, %v2021_v15  ;;  %4461 = vmatpush3.bf16.msra.mxu1 %v5035_v43  ;;  %v514_v26 = vadd.f32 %v5058_v49, %v513_v24  ;;  %v3954_v27 = vpop.f32.mrb[49].mxu0  ;;  %v1645_v15 = vld [vmem:[#allocation3 + $0xf] sm:$0xf] }
 0x214   :  { %4521 = vmatpush3.bf16.msra.mxu0 %v5109_v55  ;;  %v671_v29 = vmax.f32 %v669_v18, %v670_v22  ;;  %4462 = vmatprep.subr.bf16.mxu1 %v4753_v6  ;;  %573 = vst.msk [vmem:[#allocation2 + $0xa8] sm:$0xff] %vm153_vm3, %v548_v23  ;;  %v1795_v18 = vld [vmem:[#allocation3 + $0x14] sm:$0xf]  ;;  %v3183_v22 = vld [vmem:[%s5633_s11 + $0x20] sm:$0xff]  ;;  %v3184_v23 = vld [vmem:[%s5633_s11 + $0x28] sm:$0xff] }
 0x215   :  { %4522 = vmatprep.subr.bf16.mxu0 %v4753_v6  ;;  %4057 = vmatprep.mubr.msk.f32.mxu1 %vm4752_vm2, %v4751_v1  ;;  %v549_v30 = vmax.f32 %v514_v26, 0.0  ;;  %v518_v31 = vpop.f32.mrb[50].mxu0  ;;  %v4610_v24 = vpack.c.bf16 %v3184_v23, %v3183_v22  ;;  %v3185_v26 = vld [vmem:[%s5633_s11 + $0x30] sm:$0xff]  ;;  %v3186_v27 = vld [vmem:[%s5633_s11 + $0x38] sm:$0xff]  ;;  %v3429_v23 = vld [vmem:[%s5636_s14 + $0x20] sm:$0xff] }
 0x216   :  { %4167 = vmatprep.mubr.msk.f32.mxu0 %vm4752_vm2, %v4751_v1  ;;  %672 = vst.msk [vmem:[#allocation3 + $0x23] sm:$0x1f] %vm587_vm5, %v671_v29  ;;  %v519_v33 = vadd.f32 %v5058_v49, %v518_v31  ;;  %v3957_v35 = vpop.f32.mrb[51].mxu0  ;;  %v4613_v29 = vpack.c.bf16 %v3186_v27, %v3185_v26  ;;  %v3431_v27 = vld [vmem:[%s5636_s14 + $0x30] sm:$0xff] }
 0x217   :  { %4464 = vmatpush3.bf16.msra.mxu1 %v5047_v46  ;;  %v2096_v34 = vld [vmem:[#allocation3 + $0x1e] sm:$0xf]  ;;  %574 = vst.msk [vmem:[#allocation2 + $0xb0] sm:$0xff] %vm153_vm3, %v549_v30 }
 0x218   :  { %4524 = vmatpush3.bf16.msra.mxu0 %v5121_v3  ;;  %4465 = vmatprep.subr.bf16.mxu1 %v4753_v6  ;;  %v550_v36 = vmax.f32 %v519_v33, 0.0  ;;  %v2171_v57 = vld [vmem:[#allocation3 + $0x1f] sm:$0xf] }
 0x219   :  { %4525 = vmatprep.subr.bf16.mxu0 %v4753_v6  ;;  %v523_v40 = vpop.f32.mrb[52].mxu0  ;;  %v2547_v20 = vld [vmem:[#allocation3 + $0x1e] sm:$0xf] }
 0x21a   :  { %4058 = vmatmul.mubr.msk.f32.vlgmr.msra.gmra.mrb[2].mxu1 %vm153_vm3, %v1345_v39  ;;  %575 = vst.msk [vmem:[#allocation2 + $0xb8] sm:$0xff] %vm153_vm3, %v550_v36  ;;  %v524_v41 = vadd.f32 %v5058_v49, %v523_v40  ;;  %v3960_v42 = vpop.f32.mrb[53].mxu0 }
 0x21b   :  { %4168 = vmatmul.mubr.msk.f32.vlgmr.msra.gmra.mrb[54].mxu0 %vm153_vm3, %v2096_v34  ;;  %4467 = vmatpush3.bf16.msra.mxu1 %v5082_v32  ;;  %v674_v45 = vld [vmem:[#allocation2 + $0xa0] ss:$2 sm:$0x1f]  ;;  %v676_v48 = vld [vmem:[#allocation2 + $0xa1] ss:$2 sm:$0x1f] }
 0x21c   :  { %4527 = vmatpush3.bf16.msra.mxu0 %v5135_v14  ;;  %4468 = vmatprep.subr.bf16.mxu1 %v4753_v6  ;;  %v551_v50 = vmax.f32 %v524_v41, 0.0  ;;  %v681_v51 = vmax.f32 %v674_v45, %v676_v48 }
 0x21d   :  { %4528 = vmatprep.subr.bf16.mxu0 %v4753_v6  ;;  %4068 = vmatprep.mubr.msk.f32.mxu1 %vm4752_vm2, %v4751_v1  ;;  %v2246_v7 = vld [vmem:[#allocation3 + $0x23] sm:$0xf] }
 0x21e   :  { %4178 = vmatprep.mubr.msk.f32.mxu0 %vm4752_vm2, %v4751_v1  ;;  %v678_v49 = vld [vmem:[#allocation2 + $0xaa] ss:$2 sm:$0x1f]  ;;  %v680_v54 = vld [vmem:[#allocation2 + $0xab] ss:$2 sm:$0x1f] }
 0x21f   :  { %576 = vst.msk [vmem:[#allocation2 + $0xc0] sm:$0xff] %vm153_vm3, %v551_v50  ;;  %4470 = vmatpush3.bf16.msra.mxu1 %v5094_v44  ;;  %v682_v56 = vmax.f32 %v678_v49, %v680_v54  ;;  %v2321_v10 = vld [vmem:[#allocation3 + $0x24] sm:$0xf]  ;;  %v3171_v54 = vld [vmem:[%s5632_s10] sm:$0xff] }
 0x220   :  { %4530 = vmatpush3.bf16.msra.mxu0 %v5149_v28  ;;  %4471 = vmatprep.subr.bf16.mxu1 %v4753_v6 }
 0x221   :  { %4531 = vmatprep.subr.bf16.mxu0 %v4753_v6  ;;  %v683_v59 = vmax.f32 %v681_v51, %v682_v56  ;;  %v686_v60 = vld [vmem:[#allocation2 + $0xb4] ss:$2 sm:$0x1f]  ;;  %v688_v61 = vld [vmem:[#allocation2 + $0xb5] ss:$2 sm:$0x1f] }
 0x222   :  { %4069 = vmatmul.mubr.msk.f32.vlgmr.msra.gmra.mrb[2].mxu1 %vm153_vm3, %v1420_v58  ;;  %v693_v62 = vmax.f32 %v686_v60, %v688_v61  ;;  %v3172_v56 = vld [vmem:[%s5632_s10 + $0x8] sm:$0xff]  ;;  %v3173_v60 = vld [vmem:[%s5632_s10 + $0x10] sm:$0xff]  ;;  %v3174_v61 = vld [vmem:[%s5632_s10 + $0x18] sm:$0xff] }
 0x223   :  { %4179 = vmatmul.mubr.msk.f32.vlgmr.msra.gmra.mrb[54].mxu0 %vm153_vm3, %v2171_v57  ;;  %684 = vst.msk [vmem:[#allocation3 + $0x28] sm:$0x1f] %vm587_vm5, %v683_v59  ;;  %4473 = vmatpush3.bf16.msra.mxu1 %v5109_v55  ;;  %v4616_v58 = vpack.c.bf16 %v3172_v56, %v3171_v54 }
 0x224   :  { %4533 = vmatpush3.bf16.msra.mxu0 %v5165_v37  ;;  %4474 = vmatprep.subr.bf16.mxu1 %v4753_v6 }
 0x225   :  { %4534 = vmatprep.subr.bf16.mxu0 %v4753_v6  ;;  %4079 = vmatprep.mubr.msk.f32.mxu1 %vm4752_vm2, %v4751_v1 }
 0x226   :  { %4189 = vmatprep.mubr.msk.f32.mxu0 %vm4752_vm2, %v4751_v1  ;;  %v690_v0 = vld [vmem:[#allocation2 + $0xbe] ss:$2 sm:$0x1f]  ;;  %v692_v2 = vld [vmem:[#allocation2 + $0xbf] ss:$2 sm:$0x1f] }
 0x227   :  { %v694_v4 = vmax.f32 %v690_v0, %v692_v2  ;;  %4476 = vmatpush3.bf16.msra.mxu1 %v5121_v3  ;;  %v3175_v0 = vld [vmem:[%s5632_s10 + $0x20] sm:$0xff]  ;;  %v3176_v2 = vld [vmem:[%s5632_s10 + $0x28] sm:$0xff] }
 0x228   :  { %4536 = vmatpush3.bf16.msra.mxu0 %v5178_v52  ;;  %4477 = vmatprep.subr.bf16.mxu1 %v4753_v6 }
 0x229   :  { %4537 = vmatprep.subr.bf16.mxu0 %v4753_v6  ;;  %v695_v8 = vmax.f32 %v693_v62, %v694_v4  ;;  %v4619_v62 = vpack.c.bf16 %v3174_v61, %v3173_v60  ;;  %v4622_v4 = vpack.c.bf16 %v3176_v2, %v3175_v0  ;;  %v3630_v0 = vld [vmem:[%s5637_s15] ss:$0 sm:$0xff] }
 0x22a   :  { %4080 = vmatmul.mubr.msk.f32.vlgmr.msra.gmra.mrb[2].mxu1 %vm153_vm3, %v1495_v9  ;;  %v2396_v13 = vld [vmem:[#allocation3 + $0x28] sm:$0xf]  ;;  %v3537_v9 = vld [vmem:[%s5627_s5] ss:$0 sm:$0xff] }
 0x22b   :  { %4190 = vmatmul.mubr.msk.f32.vlgmr.msra.gmra.mrb[54].mxu0 %vm153_vm3, %v2246_v7  ;;  %696 = vst.msk [vmem:[#allocation3 + $0x2d] sm:$0x1f] %vm587_vm5, %v695_v8  ;;  %4479 = vmatpush3.bf16.msra.mxu1 %v5135_v14  ;;  %v2471_v16 = vld [vmem:[#allocation3 + $0x29] sm:$0xf]  ;;  %v3178_v8 = vld [vmem:[%s5632_s10 + $0x38] sm:$0xff] }
 0x22c   :  { %4539 = vmatpush3.bf16.msra.mxu0 %v5192_v63  ;;  %4480 = vmatprep.subr.bf16.mxu1 %v4753_v6  ;;  %v3177_v7 = vld [vmem:[%s5632_s10 + $0x30] sm:$0xff] }
 0x22d   :  { %4540 = vmatprep.subr.bf16.mxu0 %v4753_v6  ;;  %4090 = vmatprep.mubr.msk.f32.mxu1 %vm4752_vm2, %v4751_v1 }
 0x22e   :  { %4200 = vmatprep.mubr.msk.f32.mxu0 %vm4752_vm2, %v4751_v1 }
 0x22f   :  { %4482 = vmatpush3.bf16.msra.mxu1 %v5149_v28 }
 0x230   :  { %4542 = vmatpush3.bf16.msra.mxu0 %v5205_v12  ;;  %4483 = vmatprep.subr.bf16.mxu1 %v4753_v6 }
 0x231   :  { %4543 = vmatprep.subr.bf16.mxu0 %v4753_v6 }
 0x232   :  { %4091 = vmatmul.mubr.msk.f32.vlgmr.msra.gmra.mrb[2].mxu1 %vm153_vm3, %v1570_v11  ;;  %v224_v11 = vadd.f32 %v3537_v9, %v5053_v47  ;;  %v3337_v47 = vld [vmem:[%s5634_s12 + $0x18] sm:$0xff] }
 0x233   :  { %4201 = vmatmul.mubr.msk.f32.vlgmr.msra.gmra.mrb[54].mxu0 %vm153_vm3, %v2321_v10  ;;  %4485 = vmatpush3.bf16.msra.mxu1 %v5165_v37  ;;  %v4625_v10 = vpack.c.bf16 %v3178_v8, %v3177_v7 }
 0x234   :  { %4545 = vmatpush3.bf16.msra.mxu0 %v5219_v25  ;;  %4486 = vmatprep.subr.bf16.mxu1 %v4753_v6 }
 0x235   :  { %4546 = vmatprep.subr.bf16.mxu0 %v4753_v6  ;;  %4101 = vmatprep.mubr.msk.f32.mxu1 %vm4752_vm2, %v4751_v1 }
 0x236   :  { %4211 = vmatprep.mubr.msk.f32.mxu0 %vm4752_vm2, %v4751_v1 }
 0x237   :  { %4488 = vmatpush3.bf16.msra.mxu1 %v5178_v52 }
 0x238   :  { %4548 = vmatpush3.bf16.msra.mxu0 %v5234_v38  ;;  %4489 = vmatprep.subr.bf16.mxu1 %v4753_v6 }
 0x239   :  { %4549 = vmatprep.subr.bf16.mxu0 %v4753_v6 }
 0x23a   :  { %4102 = vmatmul.mubr.msk.f32.vlgmr.msra.gmra.mrb[2].mxu1 %vm153_vm3, %v1645_v15  ;;  %v3335_v15 = vld [vmem:[%s5634_s12 + $0x8] sm:$0xff] }
 0x23b   :  { %4212 = vmatmul.mubr.msk.f32.vlgmr.msra.gmra.mrb[54].mxu0 %vm153_vm3, %v2396_v13  ;;  %4491 = vmatpush3.bf16.msra.mxu1 %v5192_v63  ;;  %v3334_v13 = vld [vmem:[%s5634_s12] sm:$0xff] }
 0x23c   :  { %4551 = vmatpush3.bf16.msra.mxu0 %v5248_v53  ;;  %4492 = vmatprep.subr.bf16.mxu1 %v4753_v6 }
 0x23d   :  { %4552 = vmatprep.subr.bf16.mxu0 %v4753_v6  ;;  %4112 = vmatprep.mubr.msk.f32.mxu1 %vm4752_vm2, %v4751_v1 }
 0x23e   :  { %4222 = vmatprep.mubr.msk.f32.mxu0 %vm4752_vm2, %v4751_v1 }
 0x23f   :  { %4494 = vmatpush3.bf16.msra.mxu1 %v5205_v12 }
 0x240   :  { %4554 = vmatpush3.bf16.msra.mxu0 %v5263_v5  ;;  %4495 = vmatprep.subr.bf16.mxu1 %v4753_v6 }
 0x241   :  { %4603 = vmatprep.subr.bf16.mxu0 %v4753_v6 }
 0x242   :  { %4113 = vmatmul.mubr.msk.f32.vlgmr.msra.gmra.mrb[2].mxu1 %vm153_vm3, %v1720_v17  ;;  %v227_v17 = vmax.f32 %v224_v11, 0.0 }
 0x243   :  { %4223 = vmatmul.mubr.msk.f32.vlgmr.msra.gmra.mrb[54].mxu0 %vm153_vm3, %v2471_v16  ;;  %4497 = vmatpush3.bf16.msra.mxu1 %v5219_v25  ;;  %v4628_v16 = vpack.c.bf16 %v3335_v15, %v3334_v13 }
 0x244   :  { %4123 = vmatprep.mubr.msk.f32.mxu1 %vm4752_vm2, %v4751_v1  ;;  %4498 = vmatprep.subr.bf16.mxu1 %v4753_v6 }
 0x245   :  { %4329 = vmatprep.mubr.msk.f32.mxu0 %vm4752_vm2, %v4751_v1 }
 0x247   :  { %4500 = vmatpush3.bf16.msra.mxu1 %v5234_v38 }
 0x248   :  { %4501 = vmatprep.subr.bf16.mxu1 %v4753_v6 }
 0x24a   :  { %4124 = vmatmul.mubr.msk.f32.vlgmr.msra.gmra.mrb[2].mxu1 %vm153_vm3, %v1795_v18  ;;  %v3336_v18 = vld [vmem:[%s5634_s12 + $0x10] sm:$0xff] }
 0x24b   :  { %4503 = vmatpush3.bf16.msra.mxu1 %v5248_v53  ;;  %4134 = vmatprep.mubr.msk.f32.mxu1 %vm4752_vm2, %v4751_v1 }
 0x24c   :  { %4504 = vmatprep.subr.bf16.mxu1 %v4753_v6 }
 0x24f   :  { %4506 = vmatpush3.bf16.msra.mxu1 %v5263_v5 }
 0x250   :  { %4555 = vmatprep.subr.bf16.mxu1 %v4753_v6 }
 0x252   :  { %4135 = vmatmul.mubr.msk.f32.vlgmr.msra.gmra.mrb[2].mxu1 %vm153_vm3, %v1870_v19  ;;  %v4631_v19 = vpack.c.bf16 %v3337_v47, %v3336_v18 }
 0x253   :  { %4557 = vmatpush3.bf16.msra.mxu1 %v5035_v43  ;;  %4233 = vmatprep.mubr.msk.f32.mxu1 %vm4752_vm2, %v4751_v1  ;;  %v2622_v43 = vld [vmem:[#allocation3 + $0x1f] sm:$0xf] }
 0x254   :  { %4558 = vmatprep.subr.bf16.mxu1 %v4753_v6 }
 0x257   :  { %4560 = vmatpush3.bf16.msra.mxu1 %v5047_v46  ;;  %v2697_v46 = vld [vmem:[#allocation3 + $0x23] sm:$0xf] }
 0x258   :  { %4561 = vmatprep.subr.bf16.mxu1 %v4753_v6 }
 0x25a   :  { %4234 = vmatmul.mubr.msk.f32.vlgmr.msra.gmra.mrb[4].mxu1 %vm153_vm3, %v2547_v20  ;;  %v3338_v20 = vld [vmem:[%s5634_s12 + $0x20] sm:$0xff] }
 0x25b   :  { %4563 = vmatpush3.bf16.msra.mxu1 %v5082_v32  ;;  %4244 = vmatprep.mubr.msk.f32.mxu1 %vm4752_vm2, %v4751_v1  ;;  %v2772_v32 = vld [vmem:[#allocation3 + $0x24] sm:$0xf] }
 0x25c   :  { %4564 = vmatprep.subr.bf16.mxu1 %v4753_v6 }
 0x25f   :  { %4566 = vmatpush3.bf16.msra.mxu1 %v5094_v44  ;;  %v2847_v44 = vld [vmem:[#allocation3 + $0x28] sm:$0xf] }
 0x260   :  { %4567 = vmatprep.subr.bf16.mxu1 %v4753_v6 }
 0x262   :  { %4245 = vmatmul.mubr.msk.f32.vlgmr.msra.gmra.mrb[4].mxu1 %vm153_vm3, %v2622_v43  ;;  %v3339_v43 = vld [vmem:[%s5634_s12 + $0x28] sm:$0xff] }
 0x263   :  { %4569 = vmatpush3.bf16.msra.mxu1 %v5109_v55  ;;  %4255 = vmatprep.mubr.msk.f32.mxu1 %vm4752_vm2, %v4751_v1  ;;  %v2922_v55 = vld [vmem:[#allocation3 + $0x29] sm:$0xf] }
 0x264   :  { %4570 = vmatprep.subr.bf16.mxu1 %v4753_v6 }
 0x267   :  { %4572 = vmatpush3.bf16.msra.mxu1 %v5121_v3  ;;  %v2997_v3 = vld [vmem:[#allocation3 + $0x2d] sm:$0xf] }
 0x268   :  { %4573 = vmatprep.subr.bf16.mxu1 %v4753_v6 }
 0x26a   :  { %4256 = vmatmul.mubr.msk.f32.vlgmr.msra.gmra.mrb[4].mxu1 %vm153_vm3, %v2697_v46 }
 0x26b   :  { %4575 = vmatpush3.bf16.msra.mxu1 %v5135_v14  ;;  %4266 = vmatprep.mubr.msk.f32.mxu1 %vm4752_vm2, %v4751_v1  ;;  %v3072_v14 = vld [vmem:[#allocation3 + $0x2e] sm:$0xf] }
 0x26c   :  { %4576 = vmatprep.subr.bf16.mxu1 %v4753_v6 }
 0x26f   :  { %4578 = vmatpush3.bf16.msra.mxu1 %v5149_v28  ;;  %v3594_v28 = vld [vmem:[%s5631_s9] ss:$0 sm:$0xff] }
 0x270   :  { %4579 = vmatprep.subr.bf16.mxu1 %v4753_v6 }
 0x272   :  { %4267 = vmatmul.mubr.msk.f32.vlgmr.msra.gmra.mrb[4].mxu1 %vm153_vm3, %v2772_v32 }
 0x273   :  { %4581 = vmatpush3.bf16.msra.mxu1 %v5165_v37  ;;  %4277 = vmatprep.mubr.msk.f32.mxu1 %vm4752_vm2, %v4751_v1 }
 0x274   :  { %4582 = vmatprep.subr.bf16.mxu1 %v4753_v6 }
 0x277   :  { %4584 = vmatpush3.bf16.msra.mxu1 %v5178_v52  ;;  %v3179_v52 = vld [vmem:[%s5633_s11] sm:$0xff] }
 0x278   :  { %4585 = vmatprep.subr.bf16.mxu1 %v4753_v6 }
 0x27a   :  { %4278 = vmatmul.mubr.msk.f32.vlgmr.msra.gmra.mrb[4].mxu1 %vm153_vm3, %v2847_v44  ;;  %v4634_v44 = vpack.c.bf16 %v3339_v43, %v3338_v20 }
 0x27b   :  { %4587 = vmatpush3.bf16.msra.mxu1 %v5192_v63  ;;  %4288 = vmatprep.mubr.msk.f32.mxu1 %vm4752_vm2, %v4751_v1  ;;  %v3180_v63 = vld [vmem:[%s5633_s11 + $0x8] sm:$0xff] }
 0x27c   :  { %4588 = vmatprep.subr.bf16.mxu1 %v4753_v6 }
 0x27f   :  { %4590 = vmatpush3.bf16.msra.mxu1 %v5205_v12 }
 0x280   :  { %4591 = vmatprep.subr.bf16.mxu1 %v4753_v6 }
 0x282   :  { %4289 = vmatmul.mubr.msk.f32.vlgmr.msra.gmra.mrb[4].mxu1 %vm153_vm3, %v2922_v55 }
 0x283   :  { %4593 = vmatpush3.bf16.msra.mxu1 %v5219_v25  ;;  %4299 = vmatprep.mubr.msk.f32.mxu1 %vm4752_vm2, %v4751_v1 }
 0x284   :  { %4594 = vmatprep.subr.bf16.mxu1 %v4753_v6 }
 0x287   :  { %4596 = vmatpush3.bf16.msra.mxu1 %v5234_v38  ;;  %v4604_v38 = vpack.c.bf16 %v3180_v63, %v3179_v52 }
 0x288   :  { %4597 = vmatprep.subr.bf16.mxu1 %v4753_v6 }
 0x289   :  { %4605 = vmatpush3.bf16.msra.mxu0 %v4604_v38  ;;  %v3426_v38 = vld [vmem:[%s5636_s14 + $0x8] sm:$0xff] }
 0x28a   :  { %4300 = vmatmul.mubr.msk.f32.vlgmr.msra.gmra.mrb[4].mxu1 %vm153_vm3, %v2997_v3  ;;  %4606 = vmatprep.subr.bf16.mxu0 %v4753_v6 }
 0x28b   :  { %4599 = vmatpush3.bf16.msra.mxu1 %v5248_v53  ;;  %4310 = vmatprep.mubr.msk.f32.mxu1 %vm4752_vm2, %v4751_v1  ;;  %v3181_v53 = vld [vmem:[%s5633_s11 + $0x10] sm:$0xff] }
 0x28c   :  { %4600 = vmatprep.subr.bf16.mxu1 %v4753_v6 }
 0x28f   :  { %4602 = vmatpush3.bf16.msra.mxu1 %v5263_v5  ;;  %v3182_v5 = vld [vmem:[%s5633_s11 + $0x18] sm:$0xff] }
 0x290   :  { %4639 = vmatprep.subr.bf16.mxu1 %v4753_v6  ;;  %v4607_v21 = vpack.c.bf16 %v3182_v5, %v3181_v53  ;;  %v3427_v53 = vld [vmem:[%s5636_s14 + $0x10] sm:$0xff] }
 0x292   :  { %4311 = vmatmul.mubr.msk.f32.vlgmr.msra.gmra.mrb[4].mxu1 %vm153_vm3, %v3072_v14  ;;  %4608 = vmatpush3.bf16.msra.mxu0 %v4607_v21  ;;  %v3341_v14 = vld [vmem:[%s5634_s12 + $0x38] sm:$0xff] }
 0x293   :  { %4402 = vmatprep.mubr.msk.f32.mxu1 %vm4752_vm2, %v4751_v1  ;;  %4609 = vmatprep.subr.bf16.mxu0 %v4753_v6  ;;  %v3428_v21 = vld [vmem:[%s5636_s14 + $0x18] sm:$0xff] }
 0x294   :  { %v4643_v22 = vpack.c.bf16 %v3428_v21, %v3427_v53 }
 0x296   :  { %4611 = vmatpush3.bf16.msra.mxu0 %v4610_v24  ;;  %v3430_v24 = vld [vmem:[%s5636_s14 + $0x28] sm:$0xff] }
 0x297   :  { %4612 = vmatprep.subr.bf16.mxu0 %v4753_v6  ;;  %v4646_v26 = vpack.c.bf16 %v3430_v24, %v3429_v23 }
 0x29a   :  { %4614 = vmatpush3.bf16.msra.mxu0 %v4613_v29  ;;  %v3432_v29 = vld [vmem:[%s5636_s14 + $0x38] sm:$0xff] }
 0x29b   :  { %4615 = vmatprep.subr.bf16.mxu0 %v4753_v6 }
 0x2e5   :  { %v1338_v37 = vpop.f32.mrb[0].mxu1 }
 0x2e6   :  { %v4663_v12 = vadd.f32 %v3594_v28, %v1338_v37  ;;  %v4048_v25 = vpop.f32.mrb[1].mxu1 }
 0x2e7   :  { %v3425_v25 = vld [vmem:[%s5636_s14] sm:$0xff] }
 0x2e8   :  { %1344 = vst.msk [vmem:[#allocation4] sm:$0xf] %vm1343_vm6, %v4663_v12  ;;  %v4640_v5 = vpack.c.bf16 %v3426_v38, %v3425_v25 }
 0x2ea   :  { %4641 = vmatpush3.bf16.msra.mxu1 %v4640_v5 }
 0x2eb   :  { %4642 = vmatprep.subr.bf16.mxu1 %v4753_v6 }
 0x2ee   :  { %4644 = vmatpush3.bf16.msra.mxu1 %v4643_v22 }
 0x2ef   :  { %4645 = vmatprep.subr.bf16.mxu1 %v4753_v6 }
 0x2f2   :  { %4647 = vmatpush3.bf16.msra.mxu1 %v4646_v26 }
 0x2f3   :  { %4648 = vmatprep.subr.bf16.mxu1 %v4753_v6 }
 0x316   :  { %v2541_v30 = vpop.f32.mrb[54].mxu0 }
 0x317   :  { %v4665_v31 = vadd.f32 %v3594_v28, %v2541_v30  ;;  %v4224_v33 = vpop.f32.mrb[55].mxu0  ;;  %v4649_v30 = vpack.c.bf16 %v3432_v29, %v3431_v27 }
 0x318   :  { %v3434_v33 = vld [vmem:[%s5636_s14 + $0x48] sm:$0xff] }
 0x319   :  { %2546 = vst.msk [vmem:[#allocation4 + $0x8] sm:$0xf] %vm1343_vm6, %v4665_v31  ;;  %v3433_v31 = vld [vmem:[%s5636_s14 + $0x40] sm:$0xff]  ;;  %4650 = vmatpush3.bf16.msra.mxu1 %v4649_v30 }
 0x31a   :  { %4651 = vmatprep.subr.bf16.mxu1 %v4753_v6 }
 0x320   :  { %v3148_v42 = vld [vmem:[#allocation4] ss:$8 sm:$0x3]  ;;  %v3150_v45 = vld [vmem:[#allocation4 + $0x1] ss:$8 sm:$0x3] }
 0x321   :  { %v3151_v51 = vmax.f32 %v3148_v42, %v3150_v45  ;;  %v3160_v55 = vld [vmem:[#allocation4 + $0x2] ss:$8 sm:$0x3]  ;;  %v3162_v3 = vld [vmem:[#allocation4 + $0x3] ss:$8 sm:$0x3] }
 0x322   :  { %v3163_v37 = vmax.f32 %v3160_v55, %v3162_v3  ;;  %v3439_v45 = vld [vmem:[%s5636_s14 + $0x70] sm:$0xff] }
 0x325   :  { %v1940_v34 = vpop.f32.mrb[2].mxu1 }
 0x326   :  { %v4664_v35 = vadd.f32 %v3594_v28, %v1940_v34  ;;  %v4136_v36 = vpop.f32.mrb[3].mxu1  ;;  %v4652_v34 = vpack.c.bf16 %v3434_v33, %v3433_v31 }
 0x327   :  { %v3436_v36 = vld [vmem:[%s5636_s14 + $0x58] sm:$0xff] }
 0x328   :  { %1945 = vst.msk [vmem:[#allocation4 + $0x4] sm:$0xf] %vm1343_vm6, %v4664_v35  ;;  %v3435_v35 = vld [vmem:[%s5636_s14 + $0x50] sm:$0xff]  ;;  %4653 = vmatpush3.bf16.msra.mxu1 %v4652_v34 }
 0x329   :  { %4654 = vmatprep.subr.bf16.mxu1 %v4753_v6 }
 0x365   :  { %v3142_v39 = vpop.f32.mrb[4].mxu1 }
 0x366   :  { %v4666_v40 = vadd.f32 %v3594_v28, %v3142_v39  ;;  %v4312_v41 = vpop.f32.mrb[5].mxu1  ;;  %v4655_v39 = vpack.c.bf16 %v3436_v36, %v3435_v35 }
 0x367   :  { %v3438_v41 = vld [vmem:[%s5636_s14 + $0x68] sm:$0xff] }
 0x368   :  { %3147 = vst.msk [vmem:[#allocation4 + $0xc] sm:$0xf] %vm1343_vm6, %v4666_v40  ;;  %4656 = vmatpush3.bf16.msra.mxu1 %v4655_v39  ;;  %v3437_v40 = vld [vmem:[%s5636_s14 + $0x60] sm:$0xff] }
 0x369   :  { %4657 = vmatprep.subr.bf16.mxu1 %v4753_v6  ;;  %v4658_v42 = vpack.c.bf16 %v3438_v41, %v3437_v40 }
 0x36c   :  { %4659 = vmatpush3.bf16.msra.mxu1 %v4658_v42 }
 0x36d   :  { %4660 = vmatprep.subr.bf16.mxu1 %v4753_v6 }
 0x36f   :  { %v3153_v48 = vld [vmem:[#allocation4 + $0x4] ss:$8 sm:$0x3]  ;;  %v3155_v50 = vld [vmem:[#allocation4 + $0x5] ss:$8 sm:$0x3] }
 0x370   :  { %v3156_v49 = vmax.f32 %v3153_v48, %v3155_v50  ;;  %v3165_v46 = vld [vmem:[#allocation4 + $0x6] ss:$8 sm:$0x3]  ;;  %v3167_v32 = vld [vmem:[#allocation4 + $0x7] ss:$8 sm:$0x3] }
 0x371   :  { %v3168_v28 = vmax.f32 %v3165_v46, %v3167_v32  ;;  %v3440_v48 = vld [vmem:[%s5636_s14 + $0x78] sm:$0xff]  ;;  %s4754_s14 = smov [#allocation5]  }
 0x372   :  { %v3157_v57 = vmax.f32 %v3151_v51, %v3156_v49  ;;  %v4661_v50 = vpack.c.bf16 %v3440_v48, %v3439_v45  ;;  %s3526_s3 = sshll.u32 %s4754_s14, 4  ;;  %s3527_s3 = int_to_ptr.vmem [resolvable:$true] %s3526_s3 }
 0x373   :  { %v3169_v63 = vmax.f32 %v3163_v37, %v3168_v28  ;;  %s4727_s6 = scalar_lea.vmem %s3527_s3, 32  ;;  %p4732_p1 = scmp.lt.s32.totalorder %s3527_s3, %s3527_s3 }
 0x374   :  { %v3158_v59 = vmax.f32 %v3157_v57, 0.0  ;;  %4662 = vmatpush3.bf16.msra.mxu1 %v4661_v50  ;;  %p4728_p0 = scmp.ne.s32.totalorder %s3527_s3, %s4727_s6  ;;  %p4733_p2 = scmp.lt.s32.totalorder %s4727_s6, %s4727_s6 }
 0x375   :  { %v3170_v12 = vmax.f32 %v3169_v63, 0.0 }
 0x376   :  { %4330 = vmatmul.mubr.msk.f32.vlgmr.msra.gmra.mrb[56].mxu0 %vm3187_vm7, %v3158_v59  ;;  %p4734_p3 = por %p4733_p2, %p4732_p1 }
 0x377   :  { %4617 = vmatpush3.bf16.msra.mxu0 %v4616_v58  ;;  %4348 = vmatprep.mubr.msk.f32.mxu0 %vm4752_vm2, %v4751_v1 }
 0x378   :  { %4618 = vmatprep.subr.bf16.mxu0 %v4753_v6  ;;  %p4735_p4 = pnand %p4734_p3, %p4728_p0 }
 0x37b   :  { %4620 = vmatpush3.bf16.msra.mxu0 %v4619_v62 }
 0x37c   :  { %4621 = vmatprep.subr.bf16.mxu0 %v4753_v6 }
 0x37f   :  { %4623 = vmatpush3.bf16.msra.mxu0 %v4622_v4 }
 0x380   :  { %4624 = vmatprep.subr.bf16.mxu0 %v4753_v6 }
 0x383   :  { %4626 = vmatpush3.bf16.msra.mxu0 %v4625_v10 }
 0x384   :  { %4627 = vmatprep.subr.bf16.mxu0 %v4753_v6 }
 0x386   :  { %4349 = vmatmul.mubr.msk.f32.vlgmr.msra.gmra.mrb[58].mxu0 %vm3187_vm7, %v227_v17 }
 0x387   :  { %4629 = vmatpush3.bf16.msra.mxu0 %v4628_v16  ;;  %4367 = vmatprep.mubr.msk.f32.mxu0 %vm4752_vm2, %v4751_v1  ;;  %v3340_v1 = vld [vmem:[%s5634_s12 + $0x30] sm:$0xff] }
 0x388   :  { %4630 = vmatprep.subr.bf16.mxu0 %v4753_v6  ;;  %v4637_v52 = vpack.c.bf16 %v3341_v14, %v3340_v1 }
 0x38b   :  { %4632 = vmatpush3.bf16.msra.mxu0 %v4631_v19 }
 0x38c   :  { %4633 = vmatprep.subr.bf16.mxu0 %v4753_v6 }
 0x38f   :  { %4635 = vmatpush3.bf16.msra.mxu0 %v4634_v44 }
 0x390   :  { %4636 = vmatprep.subr.bf16.mxu0 %v4753_v6  ;;  %v3629_v6 = vld [vmem:[%s5635_s13] ss:$0 sm:$0xff] }
 0x393   :  { %4638 = vmatpush3.bf16.msra.mxu0 %v4637_v52 }
 0x396   :  { %4368 = vmatmul.mubr.msk.f32.vlgmr.msra.gmra.mrb[60].mxu0 %vm3187_vm7, %v3170_v12 }
 0x449   :  { %v3257_v51 = vpop.f32.mrb[56].mxu0 }
 0x44a   :  { %v4331_v49 = vpop.f32.mrb[57].mxu0 }
 0x459   :  { %v3330_v54 = vpop.f32.mrb[58].mxu0 }
 0x45a   :  { %v3331_v56 = vadd.f32 %v3330_v54, %v3257_v51  ;;  %v4350_v57 = vpop.f32.mrb[59].mxu0 }
 0x469   :  { %v3411_v58 = vpop.f32.mrb[60].mxu0 }
 0x46a   :  { %v3415_v59 = vadd.f32 %v3411_v58, %v3331_v56  ;;  %v4369_v60 = vpop.f32.mrb[61].mxu0 }
 0x46c   :  { %v3423_v61 = vadd.f32 %v3629_v6, %v3415_v59 }
 0x46e   :  { %v3424_v62 = vmax.f32 %v3423_v61, 0.0 }
 0x470   :  { %4403 = vmatmul.mubr.f32.vlgmr.msra.gmra.mrb[6].mxu1 %v3424_v62 }
 0x543   :  { %v3514_v2 = vpop.f32.mrb[6].mxu1 }
 0x544   :  { %v3515_v4 = vadd.f32 %v3630_v0, %v3514_v2  ;;  %v4404_v7 = vpop.f32.mrb[7].mxu1 }
 0x546   :  { %3519 = vst.msk [vmem:[#allocation5] sm:$0x3] %vm3518_vm8, %v3515_v4 }
 0x547   :  { %4738 = shalt.err (!%p4735_p4)
}
 0x548   :  { %s4739_s24 = scalar_lea.hbm %s5638_s16, 32 }
 0x549   :  { %p4740_p5 = scmp.ne.s32.totalorder %s5638_s16, %s4739_s24  ;;  %p4743_p6 = scmp.lt.u32.totalorder %s4739_s24, %s5638_s16 }
 0x54b   :  { %p4745_p7 = pnand %p4743_p6, %p4740_p5 }
 0x54d   :  { %4748 = shalt.err (!%p4745_p7)
}
 0x54e   :  { %3529 = dma.vmem_to_hbm [thread:$0]  %s3527_s3, 32, %s5638_s16, [#allocation6]  }
 0x54f   :  { %4749 = dma.done.wait [#allocation6], 32  }
 0x550   :  { %4750 = vsyncadd [#allocation6], 4294967264 }
 0x551   :  { %3533 = vsyncpa [#allocation6], 1 }

</bundles_post_ra>
